<compile_context>
chip_gen: v5e
topology: v5e:2x2
jax: 0.10.0
libtpu: 0.0.40
codegen_flags: <defaults>
</compile_context>

<pallas_src>
import functools

import jax
import jax.numpy as jnp
from jax.experimental import pallas as pl
from jax.experimental.pallas import tpu as pltpu


def _round_up(x, m):
    return ((x + m - 1) // m) * m


def _cdiv(a, b):
    return -(-a // b)


# --------------------------------------------------------------------------- #
# Kernel
# --------------------------------------------------------------------------- #
def _fusion_kernel(q_ref, k_ref, v_ref, res_ref, wqk_ref, bqk_ref, wv_ref,
                   o_ref, *, n_adapters: int, hidden: int):
    N, H = n_adapters, hidden

    # Folded query/key projection: ONE MXU matmul replaces the reference's
    # query projection followed by N per-adapter key projections.
    qk = jnp.dot(q_ref[...], wqk_ref[...],
                 preferred_element_type=jnp.float32) + bqk_ref[...]   # [tm,H]

    # Per-adapter scores: VPU multiply + XLU lane reduce on 128-lane-aligned
    # slices. The adapter-independent qp·bk term is dropped (softmax shift
    # invariance), saving a full [tm,H] multiply + cross-lane reduce per tile.
    scores = []
    for n in range(N):                        # N small & static -> unrolled
        k_n = k_ref[:, pl.ds(n * H, H)]       # relayout-free slice
        scores.append(jnp.sum(qk * k_n, axis=-1, keepdims=True))     # [tm,1]

    # Numerically-stable softmax over the adapter axis, kept as N separate
    # [tm,1] columns (no lane-sparse [tm,N] concat / per-column slicing).
    m = scores[0]
    for n in range(1, N):
        m = jnp.maximum(m, scores[n])
    exps = [jnp.exp(s - m) for s in scores]
    denom = exps[0]
    for n in range(1, N):
        denom = denom + exps[n]
    inv_denom = 1.0 / denom      # exact — approx reciprocal cost 7e-3 accuracy

    # Value path: mix raw values with the probabilities first, then ONE matmul
    #   context = sum_n p_n (v_n Wv) = (sum_n p_n v_n) Wv
    acc = exps[0] * v_ref[:, pl.ds(0, H)]
    for n in range(1, N):
        acc = acc + exps[n] * v_ref[:, pl.ds(n * H, H)]
    vmix = (acc * inv_denom).astype(wv_ref.dtype)                     # [tm,H]
    ctx = jnp.dot(vmix, wv_ref[...], preferred_element_type=jnp.float32)

    # residual_before == False -> residual added after the fusion.
    o_ref[...] = (ctx + res_ref[...]).astype(o_ref.dtype)


# --------------------------------------------------------------------------- #
# Tiling / VMEM budgeting
# --------------------------------------------------------------------------- #
def _vmem_budget_bytes():
    try:
        cap = int(pltpu.get_tpu_info().vmem_capacity_bytes)
    except Exception:
        cap = 64 * 1024 * 1024            # conservative: v7x per-TC VMEM
    budget = min(int(cap * 0.7), cap - (8 << 20))   # leave compiler headroom
    return max(budget, 16 << 20)


def _pick_tm(M, H, N, act_itemsize, w_itemsize, budget, tm_max):
    # Double-buffered activation tiles: q + residual + out (3H), k + v (2NH).
    row_bytes = (3 * H + 2 * N * H) * act_itemsize * 2
    # Weights (Wqk, Wv, bqk): budget for the worst case of double-buffering.
    weight_bytes = (2 * H * H + H) * w_itemsize * 2
    spare = budget - weight_bytes - (2 << 20)
    tm = max(8, min(tm_max, (spare // row_bytes) // 8 * 8))
    if M > 8:
        # Keep >= 2 grid steps so a dual-TensorCore chip (v7x) uses both cores.
        tm = min(tm, max(8, _round_up(_cdiv(M, 2), 8)))
    return min(tm, _round_up(M, 8))


# --------------------------------------------------------------------------- #
# Parameter preparation (one-time) and forward wrapper
# --------------------------------------------------------------------------- #
def prepare_fusion_params(params, *, temperature=1.0, dtype=jnp.float32):
    """One-time algebraic fold of the BertFusion weights.

      score_n = ((q Wq + bq) . (k_n Wk + bk)) / T
              = (q (Wq Wk^T)/T + (bq Wk^T)/T) . k_n  +  const(independent of n)

    The n-independent term is dropped (softmax shift invariance), so bk is not
    needed at all.  The value projection has no bias, so Wv passes through
    (cast only).  The fold is done in f32 and cast afterwards (bf16-safe).
    """
    inv_t = 1.0 / float(temperature)
    wq = params["wq"].astype(jnp.float32)
    wk = params["wk"].astype(jnp.float32)
    bq = params["bq"].astype(jnp.float32).reshape(1, -1)
    wqk = (wq @ wk.T) * inv_t                       # [H, H]
    bqk = (bq @ wk.T) * inv_t                       # [1, H]
    return {"wqk": wqk.astype(dtype),
            "bqk": bqk.astype(dtype),
            "wv": params["wv"].astype(dtype)}


def bert_fusion(query, key, value, residual, fused_params, *, tm_max=512):
    """query/residual: [B,S,H]; key/value: [B,S,N,H]. Returns [B,S,H]."""
    B, S, N, H = key.shape
    assert query.shape == (B, S, H) and residual.shape == (B, S, H)
    assert value.shape == (B, S, N, H)
    M = B * S

    # Free reshapes only — no HBM transpose or padding pass.
    q2 = query.reshape(M, H)
    r2 = residual.reshape(M, H)
    k2 = key.reshape(M, N * H)
    v2 = value.reshape(M, N * H)

    wqk, bqk, wv = fused_params["wqk"], fused_params["bqk"], fused_params["wv"]

    budget = _vmem_budget_bytes()
    tm = _pick_tm(M, H, N,
                  jnp.dtype(query.dtype).itemsize,
                  jnp.dtype(wqk.dtype).itemsize,
                  budget, tm_max)
    grid = (_cdiv(M, tm),)          # partial trailing block handled by Pallas

    kernel = functools.partial(_fusion_kernel, n_adapters=N, hidden=H)

    def build(weight_mode):
        wkw = {} if weight_mode is None else {"pipeline_mode": weight_mode}
        return pl.pallas_call(
            kernel,
            out_shape=jax.ShapeDtypeStruct((M, H), query.dtype),
            grid_spec=pltpu.PrefetchScalarGridSpec(
                num_scalar_prefetch=0,
                grid=grid,
                in_specs=[
                    pl.BlockSpec((tm, H), lambda i: (i, 0)),         # query
                    pl.BlockSpec((tm, N * H), lambda i: (i, 0)),     # key
                    pl.BlockSpec((tm, N * H), lambda i: (i, 0)),     # value
                    pl.BlockSpec((tm, H), lambda i: (i, 0)),         # residual
                    pl.BlockSpec((H, H), lambda i: (0, 0), **wkw),   # Wqk
                    pl.BlockSpec((1, H), lambda i: (0, 0), **wkw),   # bqk
                    pl.BlockSpec((H, H), lambda i: (0, 0), **wkw),   # Wv
                ],
                out_specs=pl.BlockSpec((tm, H), lambda i: (i, 0)),
            ),
            compiler_params=pltpu.CompilerParams(
                dimension_semantics=("parallel",),
                vmem_limit_bytes=budget),
        )

    try:
        # Constant-index weights single-buffered (halves their VMEM footprint).
        out = build(pl.Buffered(1))(q2, k2, v2, r2, wqk, bqk, wv)
    except Exception:
        out = build(None)(q2, k2, v2, r2, wqk, bqk, wv)

    return out.reshape(B, S, H)


# --------------------------------------------------------------------------- #
# Reference (PyTorch-equivalent, eval mode) and demo
# --------------------------------------------------------------------------- #
def init_params(key, hidden_size):
    """BertFusion parameter init (Adapter.init_bert_weights, torch layout
    pre-transposed to (in, out))."""
    kq, kk = jax.random.split(key, 2)
    wq = 0.02 * jax.random.normal(kq, (hidden_size, hidden_size), jnp.float32)
    bq = jnp.zeros((hidden_size,), jnp.float32)
    wk = 0.02 * jax.random.normal(kk, (hidden_size, hidden_size), jnp.float32)
    bk = jnp.zeros((hidden_size,), jnp.float32)
    # value_initialized=True: identity with 1e-6 off-diagonal, no bias.
    wv = jnp.full((hidden_size, hidden_size), 1e-6, jnp.float32)
    wv = wv.at[jnp.arange(hidden_size), jnp.arange(hidden_size)].set(1.0)
    return {"wq": wq, "bq": bq, "wk": wk, "bk": bk, "wv": wv}


def reference(query, key, value, residual, params, temperature=1.0):
    """Pure-JAX reference matching the PyTorch forward (eval mode)."""
    qp = query @ params["wq"] + params["bq"]
    kp = key @ params["wk"] + params["bk"]
    vp = value @ params["wv"]
    scores = jnp.einsum("bsh,bsnh->bsn", qp, kp) / temperature
    probs = jax.nn.softmax(scores, axis=-1)
    ctx = jnp.einsum("bsn,bsnh->bsh", probs, vp)
    return ctx + residual


if __name__ == "__main__":
    # Small demo shapes: batch=2, seq=13 (exercises the partial trailing
    # block), num_adapters=4, hidden=128 (lane-dense output).
    B, S, N, H = 2, 13, 4, 128
    root = jax.random.PRNGKey(0)
    kp_, kq_, kk_, kv_, kr_, kb1, kb2 = jax.random.split(root, 7)

    params = init_params(kp_, H)
    # Non-zero biases (init_bert_weights zeroes them) so the bqk fold and the
    # softmax shift-invariance fold are genuinely exercised by the check.
    params["bq"] = 0.1 * jax.random.normal(kb1, (H,), jnp.float32)
    params["bk"] = 0.1 * jax.random.normal(kb2, (H,), jnp.float32)

    query = jax.random.normal(kq_, (B, S, H), jnp.float32)
    key_in = jax.random.normal(kk_, (B, S, N, H), jnp.float32)
    value_in = jax.random.normal(kv_, (B, S, N, H), jnp.float32)
    residual = jax.random.normal(kr_, (B, S, H), jnp.float32)

    ref = reference(query, key_in, value_in, residual, params, temperature=1.0)

    # ---- f32 path: tight parity with the PyTorch-equivalent reference ------
    fused_f32 = prepare_fusion_params(params, temperature=1.0,
                                      dtype=jnp.float32)
    out_f32 = bert_fusion(query, key_in, value_in, residual, fused_f32)
    out_f32 = jax.block_until_ready(out_f32)
    assert out_f32.shape == (B, S, H)
    err = float(jnp.max(jnp.abs(out_f32 - ref)))
    assert jnp.allclose(out_f32, ref, atol=1e-3, rtol=1e-3), err

    # ---- bf16 path: halves HBM traffic (kernel is mem-bound); loose tol ----
    fused_bf16 = prepare_fusion_params(params, temperature=1.0,
                                       dtype=jnp.bfloat16)
    out_bf16 = bert_fusion(query.astype(jnp.bfloat16),
                           key_in.astype(jnp.bfloat16),
                           value_in.astype(jnp.bfloat16),
                           residual.astype(jnp.bfloat16),
                           fused_bf16)
    out_bf16 = jax.block_until_ready(out_bf16)
    assert out_bf16.dtype == jnp.bfloat16
    err16 = float(jnp.max(jnp.abs(out_bf16.astype(jnp.float32) - out_f32)))
    assert jnp.allclose(out_bf16.astype(jnp.float32), out_f32,
                        atol=0.12, rtol=0.1), err16

    print("KERNEL_OK")
</pallas_src>

<mosaic_0001>
module attributes {stable_mosaic.version = 11 : i64} {
  func.func @_fusion_kernel(%arg0: i32, %arg1: memref<16x128xf32, #tpu.memory_space<vmem>>, %arg2: memref<16x512xf32, #tpu.memory_space<vmem>>, %arg3: memref<16x512xf32, #tpu.memory_space<vmem>>, %arg4: memref<16x128xf32, #tpu.memory_space<vmem>>, %arg5: memref<128x128xf32, #tpu.memory_space<vmem>>, %arg6: memref<1x128xf32, #tpu.memory_space<vmem>>, %arg7: memref<128x128xf32, #tpu.memory_space<vmem>>, %arg8: memref<16x128xf32, #tpu.memory_space<vmem>>) attributes {dimension_semantics = [#tpu.dimension_semantics<parallel>], iteration_bounds = array<i64: 2>, scalar_prefetch = 0 : i64, scratch_operands = 0 : i64, tpu.core_type = #tpu.core_type<tc>, window_params = [{transform_indices = @transform_0, window_bounds = array<i64: 16, 128>}, {transform_indices = @transform_1, window_bounds = array<i64: 16, 512>}, {transform_indices = @transform_2, window_bounds = array<i64: 16, 512>}, {transform_indices = @transform_3, window_bounds = array<i64: 16, 128>}, {pipeline_mode = #tpu.pipeline_mode<synchronous>, transform_indices = @transform_4, window_bounds = array<i64: 128, 128>}, {pipeline_mode = #tpu.pipeline_mode<synchronous>, transform_indices = @transform_5, window_bounds = array<i64: 1, 128>}, {pipeline_mode = #tpu.pipeline_mode<synchronous>, transform_indices = @transform_6, window_bounds = array<i64: 128, 128>}, {transform_indices = @transform_7, window_bounds = array<i64: 16, 128>}]} {
    %c0 = arith.constant 0 : index
    %c0_0 = arith.constant 0 : index
    %0 = vector.load %arg1[%c0, %c0_0] : memref<16x128xf32, #tpu.memory_space<vmem>>, vector<16x128xf32>
    %c0_1 = arith.constant 0 : index
    %c0_2 = arith.constant 0 : index
    %1 = vector.load %arg5[%c0_1, %c0_2] : memref<128x128xf32, #tpu.memory_space<vmem>>, vector<128x128xf32>
    %cst = arith.constant dense<0.000000e+00> : vector<16x128xf32>
    %2 = tpu.matmul %0, %1, %cst {dimension_numbers = #tpu.dot_dimension_numbers<[1], [0], [0], [1], [0, 0, 1, 1], [], []>} : vector<16x128xf32>, vector<128x128xf32>, vector<16x128xf32> -> vector<16x128xf32>
    %c0_3 = arith.constant 0 : index
    %c0_4 = arith.constant 0 : index
    %3 = vector.load %arg6[%c0_3, %c0_4] : memref<1x128xf32, #tpu.memory_space<vmem>>, vector<1x128xf32>
    %4 = vector.broadcast %3 : vector<1x128xf32> to vector<16x128xf32>
    %5 = arith.addf %2, %4 : vector<16x128xf32>
    %c0_5 = arith.constant 0 : index
    %c0_6 = arith.constant 0 : index
    %6 = vector.load %arg2[%c0_5, %c0_6] : memref<16x512xf32, #tpu.memory_space<vmem>>, vector<16x128xf32>
    %7 = arith.mulf %5, %6 : vector<16x128xf32>
    %cst_7 = arith.constant dense<0.000000e+00> : vector<16xf32>
    %8 = vector.multi_reduction <add>, %7, %cst_7 [1] : vector<16x128xf32> to vector<16xf32>
    %9 = vector.shape_cast %8 : vector<16xf32> to vector<16x1xf32>
    %c0_8 = arith.constant 0 : index
    %c128 = arith.constant 128 : index
    %10 = vector.load %arg2[%c0_8, %c128] : memref<16x512xf32, #tpu.memory_space<vmem>>, vector<16x128xf32>
    %11 = arith.mulf %5, %10 : vector<16x128xf32>
    %cst_9 = arith.constant dense<0.000000e+00> : vector<16xf32>
    %12 = vector.multi_reduction <add>, %11, %cst_9 [1] : vector<16x128xf32> to vector<16xf32>
    %13 = vector.shape_cast %12 : vector<16xf32> to vector<16x1xf32>
    %c0_10 = arith.constant 0 : index
    %c256 = arith.constant 256 : index
    %14 = vector.load %arg2[%c0_10, %c256] : memref<16x512xf32, #tpu.memory_space<vmem>>, vector<16x128xf32>
    %15 = arith.mulf %5, %14 : vector<16x128xf32>
    %cst_11 = arith.constant dense<0.000000e+00> : vector<16xf32>
    %16 = vector.multi_reduction <add>, %15, %cst_11 [1] : vector<16x128xf32> to vector<16xf32>
    %17 = vector.shape_cast %16 : vector<16xf32> to vector<16x1xf32>
    %c0_12 = arith.constant 0 : index
    %c384 = arith.constant 384 : index
    %18 = vector.load %arg2[%c0_12, %c384] : memref<16x512xf32, #tpu.memory_space<vmem>>, vector<16x128xf32>
    %19 = arith.mulf %5, %18 : vector<16x128xf32>
    %cst_13 = arith.constant dense<0.000000e+00> : vector<16xf32>
    %20 = vector.multi_reduction <add>, %19, %cst_13 [1] : vector<16x128xf32> to vector<16xf32>
    %21 = vector.shape_cast %20 : vector<16xf32> to vector<16x1xf32>
    %22 = arith.maximumf %9, %13 : vector<16x1xf32>
    %23 = arith.maximumf %22, %17 : vector<16x1xf32>
    %24 = arith.maximumf %23, %21 : vector<16x1xf32>
    %25 = arith.subf %9, %24 : vector<16x1xf32>
    %26 = math.exp %25 : vector<16x1xf32>
    %27 = arith.subf %13, %24 : vector<16x1xf32>
    %28 = math.exp %27 : vector<16x1xf32>
    %29 = arith.subf %17, %24 : vector<16x1xf32>
    %30 = math.exp %29 : vector<16x1xf32>
    %31 = arith.subf %21, %24 : vector<16x1xf32>
    %32 = math.exp %31 : vector<16x1xf32>
    %33 = arith.addf %26, %28 : vector<16x1xf32>
    %34 = arith.addf %33, %30 : vector<16x1xf32>
    %35 = arith.addf %34, %32 : vector<16x1xf32>
    %cst_14 = arith.constant 1.000000e+00 : f32
    %36 = vector.broadcast %cst_14 : f32 to vector<16x1xf32>
    %37 = arith.divf %36, %35 : vector<16x1xf32>
    %c0_15 = arith.constant 0 : index
    %c0_16 = arith.constant 0 : index
    %38 = vector.load %arg3[%c0_15, %c0_16] : memref<16x512xf32, #tpu.memory_space<vmem>>, vector<16x128xf32>
    %39 = vector.broadcast %26 : vector<16x1xf32> to vector<16x128xf32>
    %40 = arith.mulf %39, %38 : vector<16x128xf32>
    %c0_17 = arith.constant 0 : index
    %c128_18 = arith.constant 128 : index
    %41 = vector.load %arg3[%c0_17, %c128_18] : memref<16x512xf32, #tpu.memory_space<vmem>>, vector<16x128xf32>
    %42 = vector.broadcast %28 : vector<16x1xf32> to vector<16x128xf32>
    %43 = arith.mulf %42, %41 : vector<16x128xf32>
    %44 = arith.addf %40, %43 : vector<16x128xf32>
    %c0_19 = arith.constant 0 : index
    %c256_20 = arith.constant 256 : index
    %45 = vector.load %arg3[%c0_19, %c256_20] : memref<16x512xf32, #tpu.memory_space<vmem>>, vector<16x128xf32>
    %46 = vector.broadcast %30 : vector<16x1xf32> to vector<16x128xf32>
    %47 = arith.mulf %46, %45 : vector<16x128xf32>
    %48 = arith.addf %44, %47 : vector<16x128xf32>
    %c0_21 = arith.constant 0 : index
    %c384_22 = arith.constant 384 : index
    %49 = vector.load %arg3[%c0_21, %c384_22] : memref<16x512xf32, #tpu.memory_space<vmem>>, vector<16x128xf32>
    %50 = vector.broadcast %32 : vector<16x1xf32> to vector<16x128xf32>
    %51 = arith.mulf %50, %49 : vector<16x128xf32>
    %52 = arith.addf %48, %51 : vector<16x128xf32>
    %53 = vector.broadcast %37 : vector<16x1xf32> to vector<16x128xf32>
    %54 = arith.mulf %52, %53 : vector<16x128xf32>
    %c0_23 = arith.constant 0 : index
    %c0_24 = arith.constant 0 : index
    %55 = vector.load %arg7[%c0_23, %c0_24] : memref<128x128xf32, #tpu.memory_space<vmem>>, vector<128x128xf32>
    %cst_25 = arith.constant dense<0.000000e+00> : vector<16x128xf32>
    %56 = tpu.matmul %54, %55, %cst_25 {dimension_numbers = #tpu.dot_dimension_numbers<[1], [0], [0], [1], [0, 0, 1, 1], [], []>} : vector<16x128xf32>, vector<128x128xf32>, vector<16x128xf32> -> vector<16x128xf32>
    %c0_26 = arith.constant 0 : index
    %c0_27 = arith.constant 0 : index
    %57 = vector.load %arg4[%c0_26, %c0_27] : memref<16x128xf32, #tpu.memory_space<vmem>>, vector<16x128xf32>
    %58 = arith.addf %56, %57 : vector<16x128xf32>
    %c0_28 = arith.constant 0 : index
    %c0_29 = arith.constant 0 : index
    %59 = vector.load %arg8[%c0_28, %c0_29] : memref<16x128xf32, #tpu.memory_space<vmem>>, vector<16x128xf32>
    tpu.vector_store %arg8[%c0_28, %c0_29], %58 {strides = array<i32>} : memref<16x128xf32, #tpu.memory_space<vmem>>, vector<16x128xf32>,
    return
  }
  func.func @transform_0(%arg0: i32) -> (i32, i32) {
    %c0_i32 = arith.constant 0 : i32
    %c0_i32_0 = arith.constant 0 : i32
    return %arg0, %c0_i32 : i32, i32
  }
  func.func @transform_1(%arg0: i32) -> (i32, i32) {
    %c0_i32 = arith.constant 0 : i32
    %c0_i32_0 = arith.constant 0 : i32
    return %arg0, %c0_i32 : i32, i32
  }
  func.func @transform_2(%arg0: i32) -> (i32, i32) {
    %c0_i32 = arith.constant 0 : i32
    %c0_i32_0 = arith.constant 0 : i32
    return %arg0, %c0_i32 : i32, i32
  }
  func.func @transform_3(%arg0: i32) -> (i32, i32) {
    %c0_i32 = arith.constant 0 : i32
    %c0_i32_0 = arith.constant 0 : i32
    return %arg0, %c0_i32 : i32, i32
  }
  func.func @transform_4(%arg0: i32) -> (i32, i32) {
    %c0_i32 = arith.constant 0 : i32
    %c0_i32_0 = arith.constant 0 : i32
    %c0_i32_1 = arith.constant 0 : i32
    return %c0_i32, %c0_i32_0 : i32, i32
  }
  func.func @transform_5(%arg0: i32) -> (i32, i32) {
    %c0_i32 = arith.constant 0 : i32
    %c0_i32_0 = arith.constant 0 : i32
    %c0_i32_1 = arith.constant 0 : i32
    return %c0_i32, %c0_i32_0 : i32, i32
  }
  func.func @transform_6(%arg0: i32) -> (i32, i32) {
    %c0_i32 = arith.constant 0 : i32
    %c0_i32_0 = arith.constant 0 : i32
    %c0_i32_1 = arith.constant 0 : i32
    return %c0_i32, %c0_i32_0 : i32, i32
  }
  func.func @transform_7(%arg0: i32) -> (i32, i32) {
    %c0_i32 = arith.constant 0 : i32
    %c0_i32_0 = arith.constant 0 : i32
    return %arg0, %c0_i32 : i32, i32
  }
}

module attributes {stable_mosaic.version = 11 : i64} {
  func.func @_fusion_kernel(%arg0: i32, %arg1: memref<16x128xf32, #tpu.memory_space<vmem>>, %arg2: memref<16x512xf32, #tpu.memory_space<vmem>>, %arg3: memref<16x512xf32, #tpu.memory_space<vmem>>, %arg4: memref<16x128xf32, #tpu.memory_space<vmem>>, %arg5: memref<128x128xf32, #tpu.memory_space<vmem>>, %arg6: memref<1x128xf32, #tpu.memory_space<vmem>>, %arg7: memref<128x128xf32, #tpu.memory_space<vmem>>, %arg8: memref<16x128xf32, #tpu.memory_space<vmem>>) attributes {dimension_semantics = [#tpu.dimension_semantics<parallel>], iteration_bounds = array<i64: 2>, scalar_prefetch = 0 : i64, scratch_operands = 0 : i64, tpu.core_type = #tpu.core_type<tc>, window_params = [{transform_indices = @transform_0, window_bounds = array<i64: 16, 128>}, {transform_indices = @transform_1, window_bounds = array<i64: 16, 512>}, {transform_indices = @transform_2, window_bounds = array<i64: 16, 512>}, {transform_indices = @transform_3, window_bounds = array<i64: 16, 128>}, {pipeline_mode = #tpu.pipeline_mode<synchronous>, transform_indices = @transform_4, window_bounds = array<i64: 128, 128>}, {pipeline_mode = #tpu.pipeline_mode<synchronous>, transform_indices = @transform_5, window_bounds = array<i64: 1, 128>}, {pipeline_mode = #tpu.pipeline_mode<synchronous>, transform_indices = @transform_6, window_bounds = array<i64: 128, 128>}, {transform_indices = @transform_7, window_bounds = array<i64: 16, 128>}]} {
    %c0 = arith.constant 0 : index
    %c0_0 = arith.constant 0 : index
    %0 = vector.load %arg1[%c0, %c0_0] : memref<16x128xf32, #tpu.memory_space<vmem>>, vector<16x128xf32>
    %c0_1 = arith.constant 0 : index
    %c0_2 = arith.constant 0 : index
    %1 = vector.load %arg5[%c0_1, %c0_2] : memref<128x128xf32, #tpu.memory_space<vmem>>, vector<128x128xf32>
    %cst = arith.constant dense<0.000000e+00> : vector<16x128xf32>
    %2 = tpu.matmul %0, %1, %cst {dimension_numbers = #tpu.dot_dimension_numbers<[1], [0], [0], [1], [0, 0, 1, 1], [], []>} : vector<16x128xf32>, vector<128x128xf32>, vector<16x128xf32> -> vector<16x128xf32>
    %c0_3 = arith.constant 0 : index
    %c0_4 = arith.constant 0 : index
    %3 = vector.load %arg6[%c0_3, %c0_4] : memref<1x128xf32, #tpu.memory_space<vmem>>, vector<1x128xf32>
    %4 = vector.broadcast %3 : vector<1x128xf32> to vector<16x128xf32>
    %5 = arith.addf %2, %4 : vector<16x128xf32>
    %c0_5 = arith.constant 0 : index
    %c0_6 = arith.constant 0 : index
    %6 = vector.load %arg2[%c0_5, %c0_6] : memref<16x512xf32, #tpu.memory_space<vmem>>, vector<16x128xf32>
    %7 = arith.mulf %5, %6 : vector<16x128xf32>
    %cst_7 = arith.constant dense<0.000000e+00> : vector<16xf32>
    %8 = vector.multi_reduction <add>, %7, %cst_7 [1] : vector<16x128xf32> to vector<16xf32>
    %9 = vector.shape_cast %8 : vector<16xf32> to vector<16x1xf32>
    %c0_8 = arith.constant 0 : index
    %c128 = arith.constant 128 : index
    %10 = vector.load %arg2[%c0_8, %c128] : memref<16x512xf32, #tpu.memory_space<vmem>>, vector<16x128xf32>
    %11 = arith.mulf %5, %10 : vector<16x128xf32>
    %cst_9 = arith.constant dense<0.000000e+00> : vector<16xf32>
    %12 = vector.multi_reduction <add>, %11, %cst_9 [1] : vector<16x128xf32> to vector<16xf32>
    %13 = vector.shape_cast %12 : vector<16xf32> to vector<16x1xf32>
    %c0_10 = arith.constant 0 : index
    %c256 = arith.constant 256 : index
    %14 = vector.load %arg2[%c0_10, %c256] : memref<16x512xf32, #tpu.memory_space<vmem>>, vector<16x128xf32>
    %15 = arith.mulf %5, %14 : vector<16x128xf32>
    %cst_11 = arith.constant dense<0.000000e+00> : vector<16xf32>
    %16 = vector.multi_reduction <add>, %15, %cst_11 [1] : vector<16x128xf32> to vector<16xf32>
    %17 = vector.shape_cast %16 : vector<16xf32> to vector<16x1xf32>
    %c0_12 = arith.constant 0 : index
    %c384 = arith.constant 384 : index
    %18 = vector.load %arg2[%c0_12, %c384] : memref<16x512xf32, #tpu.memory_space<vmem>>, vector<16x128xf32>
    %19 = arith.mulf %5, %18 : vector<16x128xf32>
    %cst_13 = arith.constant dense<0.000000e+00> : vector<16xf32>
    %20 = vector.multi_reduction <add>, %19, %cst_13 [1] : vector<16x128xf32> to vector<16xf32>
    %21 = vector.shape_cast %20 : vector<16xf32> to vector<16x1xf32>
    %22 = arith.maximumf %9, %13 : vector<16x1xf32>
    %23 = arith.maximumf %22, %17 : vector<16x1xf32>
    %24 = arith.maximumf %23, %21 : vector<16x1xf32>
    %25 = arith.subf %9, %24 : vector<16x1xf32>
    %26 = math.exp %25 : vector<16x1xf32>
    %27 = arith.subf %13, %24 : vector<16x1xf32>
    %28 = math.exp %27 : vector<16x1xf32>
    %29 = arith.subf %17, %24 : vector<16x1xf32>
    %30 = math.exp %29 : vector<16x1xf32>
    %31 = arith.subf %21, %24 : vector<16x1xf32>
    %32 = math.exp %31 : vector<16x1xf32>
    %33 = arith.addf %26, %28 : vector<16x1xf32>
    %34 = arith.addf %33, %30 : vector<16x1xf32>
    %35 = arith.addf %34, %32 : vector<16x1xf32>
    %cst_14 = arith.constant 1.000000e+00 : f32
    %36 = vector.broadcast %cst_14 : f32 to vector<16x1xf32>
    %37 = arith.divf %36, %35 : vector<16x1xf32>
    %c0_15 = arith.constant 0 : index
    %c0_16 = arith.constant 0 : index
    %38 = vector.load %arg3[%c0_15, %c0_16] : memref<16x512xf32, #tpu.memory_space<vmem>>, vector<16x128xf32>
    %39 = vector.broadcast %26 : vector<16x1xf32> to vector<16x128xf32>
    %40 = arith.mulf %39, %38 : vector<16x128xf32>
    %c0_17 = arith.constant 0 : index
    %c128_18 = arith.constant 128 : index
    %41 = vector.load %arg3[%c0_17, %c128_18] : memref<16x512xf32, #tpu.memory_space<vmem>>, vector<16x128xf32>
    %42 = vector.broadcast %28 : vector<16x1xf32> to vector<16x128xf32>
    %43 = arith.mulf %42, %41 : vector<16x128xf32>
    %44 = arith.addf %40, %43 : vector<16x128xf32>
    %c0_19 = arith.constant 0 : index
    %c256_20 = arith.constant 256 : index
    %45 = vector.load %arg3[%c0_19, %c256_20] : memref<16x512xf32, #tpu.memory_space<vmem>>, vector<16x128xf32>
    %46 = vector.broadcast %30 : vector<16x1xf32> to vector<16x128xf32>
    %47 = arith.mulf %46, %45 : vector<16x128xf32>
    %48 = arith.addf %44, %47 : vector<16x128xf32>
    %c0_21 = arith.constant 0 : index
    %c384_22 = arith.constant 384 : index
    %49 = vector.load %arg3[%c0_21, %c384_22] : memref<16x512xf32, #tpu.memory_space<vmem>>, vector<16x128xf32>
    %50 = vector.broadcast %32 : vector<16x1xf32> to vector<16x128xf32>
    %51 = arith.mulf %50, %49 : vector<16x128xf32>
    %52 = arith.addf %48, %51 : vector<16x128xf32>
    %53 = vector.broadcast %37 : vector<16x1xf32> to vector<16x128xf32>
    %54 = arith.mulf %52, %53 : vector<16x128xf32>
    %c0_23 = arith.constant 0 : index
    %c0_24 = arith.constant 0 : index
    %55 = vector.load %arg7[%c0_23, %c0_24] : memref<128x128xf32, #tpu.memory_space<vmem>>, vector<128x128xf32>
    %cst_25 = arith.constant dense<0.000000e+00> : vector<16x128xf32>
    %56 = tpu.matmul %54, %55, %cst_25 {dimension_numbers = #tpu.dot_dimension_numbers<[1], [0], [0], [1], [0, 0, 1, 1], [], []>} : vector<16x128xf32>, vector<128x128xf32>, vector<16x128xf32> -> vector<16x128xf32>
    %c0_26 = arith.constant 0 : index
    %c0_27 = arith.constant 0 : index
    %57 = vector.load %arg4[%c0_26, %c0_27] : memref<16x128xf32, #tpu.memory_space<vmem>>, vector<16x128xf32>
    %58 = arith.addf %56, %57 : vector<16x128xf32>
    %c0_28 = arith.constant 0 : index
    %c0_29 = arith.constant 0 : index
    %59 = vector.load %arg8[%c0_28, %c0_29] : memref<16x128xf32, #tpu.memory_space<vmem>>, vector<16x128xf32>
    tpu.vector_store %arg8[%c0_28, %c0_29], %58 {strides = array<i32>} : memref<16x128xf32, #tpu.memory_space<vmem>>, vector<16x128xf32>,
    return
  }
  func.func @transform_0(%arg0: i32) -> (i32, i32) {
    %c0_i32 = arith.constant 0 : i32
    %c0_i32_0 = arith.constant 0 : i32
    return %arg0, %c0_i32 : i32, i32
  }
  func.func @transform_1(%arg0: i32) -> (i32, i32) {
    %c0_i32 = arith.constant 0 : i32
    %c0_i32_0 = arith.constant 0 : i32
    return %arg0, %c0_i32 : i32, i32
  }
  func.func @transform_2(%arg0: i32) -> (i32, i32) {
    %c0_i32 = arith.constant 0 : i32
    %c0_i32_0 = arith.constant 0 : i32
    return %arg0, %c0_i32 : i32, i32
  }
  func.func @transform_3(%arg0: i32) -> (i32, i32) {
    %c0_i32 = arith.constant 0 : i32
    %c0_i32_0 = arith.constant 0 : i32
    return %arg0, %c0_i32 : i32, i32
  }
  func.func @transform_4(%arg0: i32) -> (i32, i32) {
    %c0_i32 = arith.constant 0 : i32
    %c0_i32_0 = arith.constant 0 : i32
    %c0_i32_1 = arith.constant 0 : i32
    return %c0_i32, %c0_i32_0 : i32, i32
  }
  func.func @transform_5(%arg0: i32) -> (i32, i32) {
    %c0_i32 = arith.constant 0 : i32
    %c0_i32_0 = arith.constant 0 : i32
    %c0_i32_1 = arith.constant 0 : i32
    return %c0_i32, %c0_i32_0 : i32, i32
  }
  func.func @transform_6(%arg0: i32) -> (i32, i32) {
    %c0_i32 = arith.constant 0 : i32
    %c0_i32_0 = arith.constant 0 : i32
    %c0_i32_1 = arith.constant 0 : i32
    return %c0_i32, %c0_i32_0 : i32, i32
  }
  func.func @transform_7(%arg0: i32) -> (i32, i32) {
    %c0_i32 = arith.constant 0 : i32
    %c0_i32_0 = arith.constant 0 : i32
    return %arg0, %c0_i32 : i32, i32
  }
}

</mosaic_0001>

<bundles_post_ra>
// kernel: tpu_custom_call.1
= control target key start
LH: loop header
LB: loop body
LE: loop exit
PB: predicated region body
PF: predicated region fallthrough
CT: control target
= control target key end

     0   :  { %s1633_s0 = inlined_call_operand.hbm [shape: f32[26,128], index: 0, kind: input, shape index: {}]   ;;  %s1634_s1 = inlined_call_operand.hbm [shape: f32[26,512], index: 1, kind: input, shape index: {}]   ;;  %s1635_s2 = inlined_call_operand.hbm [shape: f32[26,512], index: 2, kind: input, shape index: {}]   ;;  %s1636_s3 = inlined_call_operand.hbm [shape: f32[26,128], index: 3, kind: input, shape index: {}]   ;;  %s1637_s4 = inlined_call_operand.hbm [shape: f32[128,128], index: 4, kind: input, shape index: {}]   ;;  %s1638_s5 = inlined_call_operand.vmem [shape: f32[1,128], index: 5, kind: input, shape index: {}]   ;;  %s1639_s6 = inlined_call_operand.hbm [shape: f32[128,128], index: 6, kind: input, shape index: {}]   ;;  %s1640_s7 = inlined_call_operand.hbm [shape: f32[26,128], index: 7, kind: output, shape index: {}]  }
   0x1   :  { %1657 = sst [smem:[#allocation26_spill]] %s1634_s1 }
   0x2   :  { %1658 = sst [smem:[#allocation27_spill]] %s1637_s4 }
   0x3   :  { %1659 = sst [smem:[#allocation28_spill]] %s1639_s6 }
   0x4   :  { %12 = vsyncpa [#allocation3], 0 }
   0x5   :  { %14 = vsyncpa [#allocation3 + $0x1], 0 }
   0x6   :  { %15 = vsyncpa [#allocation6], 0 }
   0x7   :  { %17 = vsyncpa [#allocation6 + $0x1], 0 }
   0x8   :  { %18 = vsyncpa [#allocation9], 0 }
   0x9   :  { %20 = vsyncpa [#allocation9 + $0x1], 0 }
   0xa   :  { %21 = vsyncpa [#allocation12], 0 }
   0xb   :  { %22 = vsyncpa [#allocation4], 0 }
   0xc   :  { %24 = vsyncpa [#allocation4 + $0x1], 0  ;;  %s1338_s24 = smov 0   ;;  %s1340_s25 = smov 0  }
   0xd   :  { %s1342_s26 = smov 0   ;;  %s1344_s27 = smov 0  }
   0xe LB: > { %1660 = sst [smem:[#allocation20_spill]] %s1276_s24  ;;  %s1359_s28 = sadd.s32 4294967295, %s1288_s27   ;;  %s1288_s27 = sphi %s1344_s27, %s1689_s27   ;;  %s1284_s26 = sphi %s1342_s26, %s1691_s26   ;;  %s1280_s25 = sphi %s1340_s25, %s1693_s25   ;;  %s1276_s24 = sphi %s1338_s24, %s1692_s24  }
   0xf   : > { %1661 = sst [smem:[#allocation21_spill]] %s1284_s26  ;;  %s846_s29 = sadd.s32 4294967294, %s1288_s27  }
  0x10   : > { %p50_p0 = scmp.ne.s32.totalorder %s1280_s25, %s1276_s24  ;;  %p1647_p1 = scmp.eq.s32.totalorder %s1359_s28, 0 }
  0x11   : > { %p215_p2 = scmp.eq.s32.totalorder %s1359_s28, 1  ;;  %p221_p3 = scmp.eq.s32.totalorder %s846_s29, 1 }
  0x12   : > { %p1368_p4 = por %p1647_p1, %p50_p0  ;;  %p847_p5 = scmp.ge.s32.totalorder %s1288_s27, 1 }
  0x13   : > { %p1373_p6 = por %p221_p3, %p50_p0  ;;  %p228_p7 = scmp.lt.s32.totalorder %s1288_s27, 3 }
  0x14   : > { %s1665_s4 = sld [smem:[#allocation27_spill]]  ;;  %s1290_s13 = smov [#allocation10]  }
  0x15   : > { %s1663_s8 = scalar_select %p1373_p6, 1, 0 }
  0x16   : > { %p1381_p8 = pnand %p847_p5, %p228_p7  ;;  %s241_s14 = sshll.u32 %s1290_s13, 4  ;;  %s242_s14 = int_to_ptr.vmem [resolvable:$true] %s241_s14 }
  0x17   : > { %1664 = sst [smem:[#allocation22_spill]] %s1663_s8  ;;  %s1395_s16 = sadd.s32 1, %s1288_s27  }
  0x18   : > { %p935_p9 = pneg %p1381_p8  ;;  %1668 = sst [smem:[#allocation23_spill]] %s1395_s16 }
  0x19   : > { %s1641_s17 = smov 128   ;;  %s1643_s18 = smov 8  }
  0x1a   : > { %s239_s11 = sshll.u32 %s1665_s4, 4  ;;  %p1389_p10 = pnand %p935_p9, %p1647_p1  ;;  %s240_s11 = int_to_ptr.hbm [resolvable:$true] %s239_s11 }
  0x1b   : > { %s34_s19 = ssub.s32 %s1288_s27, %s1395_s16  ;;  %s37_s20 = sadd.s32 1, %s1284_s26 }
  0x1c   : > { %938 = dma.hbm_to_vmem [thread:$0]  (!%p1389_p10), %s240_s11, 2048, %s242_s14, [#allocation9], %s1641_s17, %s1641_s17, %s1643_s18  }
  0x1d   : > { %p35_p12 = scmp.eq.s32.totalorder %s34_s19, 0  ;;  %p44_p13 = scmp.ne.s32.totalorder %s1284_s26, %s1280_s25 }
  0x1e   : > { %p45_p0 = scmp.eq.s32.totalorder %s1288_s27, 0  ;;  %p961_p3 = scmp.lt.s32.totalorder %s1288_s27, 2 }
  0x1f   : > { %s1410_s21 = scalar_select %p35_p12, %s1284_s26, %s37_s20  }
  0x20   : > { %p46_p5 = por %p45_p0, %p44_p13  ;;  %p1414_p7 = por %p215_p2, %p44_p13 }
  0x21   : > { %1669 = sst [smem:[#allocation24_spill]] %s1410_s21  ;;  %s1419_s23 = sand.u32 1, %s1284_s26  }
  0x22   : > { %s1670_s22 = scalar_select %p1414_p7, 1, 0 }
  0x23   : > { %s1648_s29 = sand.u32 1, %s1288_s27   ;;  %p1422_p9 = pnand %p961_p3, %p46_p5 }
  0x24   : > { %1671 = sst [smem:[#allocation25_spill]] %s1670_s22  ;;  %s1646_s10 = sshll.u32 %s1419_s23, 6 }
  0x25   : > { %s880_s11 = sshll.u32 %s1288_s27, 6  ;;  %s1673_s1 = sld [smem:[#allocation26_spill]] }
  0x26   : > { %s298_s20 = scalar_lea.vmem [#allocation5], %s1646_s10  ;;  %s1435_s4 = scalar_lea.sflag [#allocation6], %s1648_s29 }
  0x27   : > { %s307_s17 = sshll.u32 %s298_s20, 4  ;;  %p1060_p12 = pneg %p1422_p9  ;;  %s308_s17 = int_to_ptr.vmem [resolvable:$true] %s307_s17 }
  0x2b   : > { %s304_s19 = scalar_lea.hbm %s1673_s1, %s880_s11  ;;  %s1063_s20 = scalar_lea.hbm %s1673_s1, 128 }
  0x2c   : > { %s305_s18 = sshll.u32 %s304_s19, 4  ;;  %s306_s18 = int_to_ptr.hbm [resolvable:$true] %s305_s18 }
  0x2d   : > { %s1056_s21 = sshra.s32 %s306_s18, 4  ;;  %s1057_s21 = int_to_ptr.hbm [resolvable:$true] %s1056_s21 }
  0x2e   : > { %s1058_s26 = scalar_lea.hbm %s1057_s21, 64  ;;  %p1064_p3 = scmp.lt.s32.totalorder %s1057_s21, %s1673_s1 }
  0x2f   : > { %p1059_p2 = scmp.ne.s32.totalorder %s1057_s21, %s1058_s26  ;;  %p1065_p5 = scmp.lt.s32.totalorder %s1063_s20, %s1058_s26 }
  0x31   : > { %p1061_p13 = pnand %p1060_p12, %p1059_p2  ;;  %p1066_p11 = por %p1065_p5, %p1064_p3 }
  0x33   : > { %p1062_p0 = pneg %p1061_p13 }
  0x35   : > { %p1067_p1 = pnand %p1066_p11, %p1062_p0 }
  0x37   : > { %1070 = shalt.err (!%p1067_p1)
}
  0x38   : > { %s1655_s29 = smov 512   ;;  %s1656_s16 = smov 32  }
  0x39   : > { %948 = dma.hbm_to_vmem [thread:$0]  (!%p1422_p9), %s306_s18, 1024, %s308_s17, %s1435_s4, %s1655_s29, %s1655_s29, %s1656_s16  }
  0x3a   : > { %s327_s26 = scalar_lea.hbm %s1635_s2, %s880_s11  ;;  %s1674_s21 = sshll.u32 %s1419_s23, 6 }
  0x3b   : > { %s321_s14 = scalar_lea.vmem [#allocation7], %s1674_s21  ;;  %s328_s19 = sshll.u32 %s327_s26, 4  ;;  %s1461_s19 = int_to_ptr.hbm [resolvable:$true] %s328_s19 }
  0x3c   : > { %s330_s20 = sshll.u32 %s321_s14, 4  ;;  %s1675_s6 = sld [smem:[#allocation28_spill]]  ;;  %s1459_s20 = int_to_ptr.vmem [resolvable:$true] %s330_s20 }
  0x3d   : > { %s1295_s22 = smov [#allocation11]   ;;  %s1676_s18 = smov 8  }
  0x3e   : > { %s258_s17 = sshll.u32 %s1295_s22, 4  ;;  %s1677_s11 = smov 128   ;;  %s259_s17 = int_to_ptr.vmem [resolvable:$true] %s258_s17 }
  0x3f   : > { %s851_s13 = sshll.u32 %s1419_s23, 4  ;;  %s878_s10 = sshll.u32 %s1288_s27, 4 }
  0x40   : > { %s281_s14 = scalar_lea.hbm %s1633_s0, %s878_s10  ;;  %s276_s16 = scalar_lea.vmem [#allocation2], %s851_s13 }
  0x41   : > { %s282_s29 = sshll.u32 %s281_s14, 4  ;;  %s284_s1 = sshll.u32 %s276_s16, 4  ;;  %s283_s29 = int_to_ptr.hbm [resolvable:$true] %s282_s29  ;;  %s285_s1 = int_to_ptr.vmem [resolvable:$true] %s284_s1 }
  0x42   : > { %s256_s24 = sshll.u32 %s1675_s6, 4  ;;  %s273_s8 = scalar_lea.sflag [#allocation3], %s1419_s23  ;;  %s257_s24 = int_to_ptr.hbm [resolvable:$true] %s256_s24 }
  0x43   : > { %941 = dma.hbm_to_vmem [thread:$0]  (!%p1389_p10), %s257_s24, 2048, %s259_s17, [#allocation12], %s1677_s11, %s1677_s11, %s1676_s18  }
  0x44   : > { %s1116_s22 = sshra.s32 %s283_s29, 4  ;;  %s1123_s17 = scalar_lea.hbm %s1633_s0, 32  ;;  %s1117_s22 = int_to_ptr.hbm [resolvable:$true] %s1116_s22 }
  0x45   : > { %s1118_s6 = scalar_lea.hbm %s1117_s22, 16  ;;  %p1124_p2 = scmp.lt.s32.totalorder %s1117_s22, %s1633_s0 }
  0x46   : > { %p1119_p1 = scmp.ne.s32.totalorder %s1117_s22, %s1118_s6  ;;  %p1125_p13 = scmp.lt.s32.totalorder %s1123_s17, %s1118_s6 }
  0x48   : > { %p1121_p11 = pnand %p1119_p1, %p1060_p12  ;;  %p1126_p0 = por %p1125_p13, %p1124_p2 }
  0x4a   : > { %p1122_p10 = pneg %p1121_p11 }
  0x4c   : > { %p1127_p3 = pnand %p1126_p0, %p1122_p10 }
  0x4e   : > { %1130 = shalt.err (!%p1127_p3)
}
  0x4f   : > { %945 = dma.hbm_to_vmem [thread:$0]  (!%p1422_p9), %s283_s29, 256, %s285_s1, %s273_s8, %s1677_s11, %s1677_s11, %s1676_s18  }
  0x50   : > { %s349_s14 = scalar_lea.hbm %s1636_s3, %s878_s10  ;;  %s344_s15 = scalar_lea.vmem [#allocation8], %s851_s13 }
  0x51   : > { %s350_s24 = sshll.u32 %s349_s14, 4  ;;  %s352_s26 = sshll.u32 %s344_s15, 4  ;;  %s1494_s24 = int_to_ptr.hbm [resolvable:$true] %s350_s24  ;;  %s1496_s26 = int_to_ptr.vmem [resolvable:$true] %s352_s26 }
  0x52   : > { %s1146_s6 = sshra.s32 %s1461_s19, 4  ;;  %s1153_s8 = scalar_lea.hbm %s1635_s2, 128  ;;  %s1147_s6 = int_to_ptr.hbm [resolvable:$true] %s1146_s6 }
  0x53   : > { %s1148_s22 = scalar_lea.hbm %s1147_s6, 64  ;;  %p1154_p10 = scmp.lt.s32.totalorder %s1147_s6, %s1635_s2 }
  0x54   : > { %p1149_p5 = scmp.ne.s32.totalorder %s1147_s6, %s1148_s22  ;;  %p1155_p2 = scmp.lt.s32.totalorder %s1153_s8, %s1148_s22 }
  0x56   : > { %p1151_p1 = pnand %p1149_p5, %p1060_p12  ;;  %p1156_p13 = por %p1155_p2, %p1154_p10 }
  0x58   : > { %p1152_p11 = pneg %p1151_p1 }
  0x5a   : > { %p1157_p0 = pnand %p1156_p13, %p1152_p11 }
  0x5c   : > { %1160 = shalt.err (!%p1157_p0)
}
  0x5d   : > { %s1678_s13 = smov 32   ;;  %s1679_s21 = smov 512  }
  0x5e   : > { %951 = dma.hbm_to_vmem [thread:$0]  (!%p1422_p9), %s1461_s19, 1024, %s1459_s20, %s1435_s4, %s1679_s21, %s1679_s21, %s1678_s13  }
  0x5f   : > { %s1680_s16 = sand.u32 1, %s1288_s27   ;;  %s1176_s14 = sshra.s32 %s1494_s24, 4  ;;  %s1177_s14 = int_to_ptr.hbm [resolvable:$true] %s1176_s14 }
  0x60   : > { %s341_s23 = scalar_lea.sflag [#allocation9], %s1680_s16  ;;  %s1178_s15 = scalar_lea.hbm %s1177_s14, 16 }
  0x61   : > { %p1179_p3 = scmp.ne.s32.totalorder %s1177_s14, %s1178_s15  ;;  %s1183_s29 = scalar_lea.hbm %s1636_s3, 32 }
  0x62   : > { %p1184_p11 = scmp.lt.s32.totalorder %s1177_s14, %s1636_s3  ;;  %p1185_p10 = scmp.lt.s32.totalorder %s1183_s29, %s1178_s15 }
  0x63   : > { %p1181_p5 = pnand %p1179_p3, %p1060_p12 }
  0x64   : > { %p1186_p2 = por %p1185_p10, %p1184_p11 }
  0x65   : > { %p1182_p1 = pneg %p1181_p5 }
  0x67   : > { %p1187_p13 = pnand %p1186_p2, %p1182_p1 }
  0x69   : > { %1190 = shalt.err (!%p1187_p13)
}
  0x6a   : > { %954 = dma.hbm_to_vmem [thread:$0]  (!%p1422_p9), %s1494_s24, 256, %s1496_s26, %s341_s23, %s1677_s11, %s1677_s11, %s1676_s18  }
  0x6b   : > { %364 = sbr.rel (%p1381_p8) target bundleno = 599 (0x257), region = 48  ;;  %s1538_s4 = sand.u32 (!%p1381_p8), 1, %s1280_s25  }
  0x6c   : > { %s1541_s20 = sshll.u32 (!%p1381_p8), %s1538_s4, 4  ;;  %s367_s19 = scalar_lea.sflag (!%p1381_p8), [#allocation3], %s1538_s4 }
  0x6d   : > { %s370_s9 = scalar_lea.vmem (!%p1381_p8), [#allocation2], %s1541_s20 }
  0x70   : > { %1251 = dma.done.wait (%p1368_p4), %s367_s19, 256  }
  0x71   : > { %1253 = vsyncadd (%p1368_p4), %s367_s19, 4294967040  ;;  %s376_s12 = sand.u32 1, %s1359_s28   ;;  %s867_s18 = sshll.u32 %s1538_s4, 6 }
  0x72   : > { %s377_s11 = scalar_lea.sflag [#allocation6], %s376_s12  ;;  %s1551_s24 = scalar_lea.vmem [#allocation5], %s867_s18 }
  0x73   : > { %1255 = dma.done.wait (%p1368_p4), %s377_s11, 2048  }
  0x74   : > { %1257 = vsyncadd (%p1368_p4), %s377_s11, 4294965248  ;;  %s1557_s26 = scalar_lea.vmem [#allocation7], %s867_s18  ;;  %s397_s10 = scalar_lea.sflag [#allocation9], %s376_s12 }
  0x75   : > { %s400_s17 = scalar_lea.vmem [#allocation8], %s1541_s20 }
  0x76   : > { %1259 = dma.done.wait (%p1368_p4), %s397_s10, 256  }
  0x77   : > { %1261 = vsyncadd (%p1368_p4), %s397_s10, 4294967040  ;;  %p1681_p8 = scmp.eq.s32.totalorder %s1359_s28, 0 }
  0x79   : > { %1263 = dma.done.wait (%p1681_p8), [#allocation9], 2048   ;;  %p1682_p9 = pmov %p1681_p8 }
  0x7a   : > { %p1683_p12 = pmov %p1681_p8 }
  0x7b   : > { %1265 = vsyncadd (%p1682_p9), [#allocation9], 4294965248 }
  0x7c   : > { %1267 = dma.done.wait (%p1683_p12), [#allocation12], 2048   ;;  %p1684_p0 = pmov %p1681_p8 }
  0x7d   : > { %v479_v0 = vld [vmem:[#allocation10 + $0x78] sm:$0xff]  ;;  %v478_v1 = vld [vmem:[#allocation10 + $0x70] sm:$0xff]  ;;  %v477_v2 = vld [vmem:[#allocation10 + $0x68] sm:$0xff]  ;;  %s884_s21 = sshll.u32 %s1359_s28, 4  ;;  %s456_s15 = scalar_lea.vmem [#allocation13], %s1541_s20 }
  0x7e   : > { %1269 = vsyncadd (%p1684_p0), [#allocation12], 4294965248  ;;  %885 = vmatpush.msra.mxu2 %v479_v0  ;;  %484 = vmatpush.msra.mxu0 %v479_v0  ;;  %v476_v3 = vld [vmem:[#allocation10 + $0x60] sm:$0xff]  ;;  %v475_v4 = vld [vmem:[#allocation10 + $0x58] sm:$0xff]  ;;  %s684_s14 = scalar_lea.hbm %s1640_s7, %s884_s21  ;;  %s685_s6 = sshll.u32 %s456_s15, 4  ;;  %s686_s6 = int_to_ptr.vmem [resolvable:$true] %s685_s6 }
  0x7f   : > { %v474_v5 = vld [vmem:[#allocation10 + $0x50] sm:$0xff]  ;;  %v473_v6 = vld [vmem:[#allocation10 + $0x48] sm:$0xff]  ;;  %v472_v7 = vld [vmem:[#allocation10 + $0x40] sm:$0xff]  ;;  %s687_s29 = sshll.u32 %s684_s14, 4  ;;  %s673_s28 = scalar_lea.sflag [#allocation4], %s1538_s4  ;;  %s688_s29 = int_to_ptr.hbm [resolvable:$true] %s687_s29 }
  0x80   : > { %886 = vmatpush.msra.mxu2 %v478_v1  ;;  %485 = vmatpush.msra.mxu0 %v478_v1  ;;  %v471_v8 = vld [vmem:[#allocation10 + $0x38] sm:$0xff]  ;;  %v470_v9 = vld [vmem:[#allocation10 + $0x30] sm:$0xff]  ;;  %v469_v10 = vld [vmem:[#allocation10 + $0x28] sm:$0xff]  ;;  %s1220_s1 = sshra.s32 %s688_s29, 4  ;;  %s1221_s1 = int_to_ptr.hbm [resolvable:$true] %s1220_s1 }
  0x81   : > { %v468_v11 = vld [vmem:[#allocation10 + $0x20] sm:$0xff]  ;;  %v467_v12 = vld [vmem:[#allocation10 + $0x18] sm:$0xff]  ;;  %v466_v13 = vld [vmem:[#allocation10 + $0x10] sm:$0xff]  ;;  %s1222_s8 = scalar_lea.hbm %s1221_s1, 16  ;;  %p1227_p1 = scmp.lt.s32.totalorder %s1221_s1, %s1640_s7 }
  0x82   : > { %887 = vmatpush.msra.mxu2 %v477_v2  ;;  %486 = vmatpush.msra.mxu0 %v477_v2  ;;  %v465_v14 = vld [vmem:[#allocation10 + $0x8] sm:$0xff]  ;;  %v464_v15 = vld [vmem:[#allocation10] sm:$0xff]  ;;  %v524_v24 = vld [vmem:[%s1551_s24 + $0x30] sm:$0xff]  ;;  %p1223_p4 = scmp.ne.s32.totalorder %s1221_s1, %s1222_s8 }
  0x83   : > { %v463_v16 = vld [vmem:[%s370_s9 + $0x8] sm:$0xff]  ;;  %v462_v17 = vld [vmem:[%s370_s9] sm:$0xff]  ;;  %s1226_s9 = scalar_lea.hbm %s1640_s7, 32 }
  0x84   : > { %888 = vmatpush.msra.mxu2 %v476_v3  ;;  %487 = vmatpush.msra.mxu0 %v476_v3  ;;  %v1005_v18 = vld [vmem:[%s1638_s5] ss:$0 sm:$0xff]  ;;  %v515_v26 = vld [vmem:[%s1551_s24 + $0x8] sm:$0xff]  ;;  %v532_v31 = vld [vmem:[%s1551_s24 + $0x38] sm:$0xff]  ;;  %p1224_p3 = pnand %p1223_p4, %p1414_p7  ;;  %p1228_p11 = scmp.lt.s32.totalorder %s1226_s9, %s1222_s8 }
  0x85   : > { %v507_v20 = vld [vmem:[%s1551_s24] sm:$0xff]  ;;  %v516_v32 = vld [vmem:[%s1551_s24 + $0x28] sm:$0xff]  ;;  %v531_v35 = vld [vmem:[%s1551_s24 + $0x18] sm:$0xff] }
  0x86   : > { %889 = vmatpush.msra.mxu2 %v475_v4  ;;  %488 = vmatpush.msra.mxu0 %v475_v4  ;;  %v508_v25 = vld [vmem:[%s1551_s24 + $0x20] sm:$0xff]  ;;  %v523_v36 = vld [vmem:[%s1551_s24 + $0x10] sm:$0xff]  ;;  %v644_v39 = vld [vmem:[#allocation11 + $0x78] sm:$0xff]  ;;  %p1225_p5 = pneg %p1224_p3  ;;  %p1229_p10 = por %p1228_p11, %p1227_p1 }
  0x87   : > { %901 = vmatpush.msra.mxu3 %v644_v39  ;;  %647 = vmatpush.msra.mxu1 %v644_v39  ;;  %v643_v40 = vld [vmem:[#allocation11 + $0x70] sm:$0xff]  ;;  %v642_v41 = vld [vmem:[#allocation11 + $0x68] sm:$0xff]  ;;  %v641_v42 = vld [vmem:[#allocation11 + $0x60] sm:$0xff] }
  0x88   : > { %890 = vmatpush.msra.mxu2 %v474_v5  ;;  %489 = vmatpush.msra.mxu0 %v474_v5  ;;  %v640_v43 = vld [vmem:[#allocation11 + $0x58] sm:$0xff]  ;;  %v639_v46 = vld [vmem:[#allocation11 + $0x50] sm:$0xff]  ;;  %v638_v48 = vld [vmem:[#allocation11 + $0x48] sm:$0xff]  ;;  %p1230_p2 = pnand %p1229_p10, %p1225_p5 }
  0x89   : > { %902 = vmatpush.msra.mxu3 %v643_v40  ;;  %648 = vmatpush.msra.mxu1 %v643_v40  ;;  %v637_v49 = vld [vmem:[#allocation11 + $0x40] sm:$0xff]  ;;  %v636_v50 = vld [vmem:[#allocation11 + $0x38] sm:$0xff]  ;;  %v635_v51 = vld [vmem:[#allocation11 + $0x30] sm:$0xff] }
  0x8a   : > { %891 = vmatpush.msra.mxu2 %v473_v6  ;;  %490 = vmatpush.msra.mxu0 %v473_v6  ;;  %v634_v54 = vld [vmem:[#allocation11 + $0x28] sm:$0xff]  ;;  %v633_v56 = vld [vmem:[#allocation11 + $0x20] sm:$0xff]  ;;  %v632_v59 = vld [vmem:[#allocation11 + $0x18] sm:$0xff] }
  0x8b   : > { %903 = vmatpush.msra.mxu3 %v642_v41  ;;  %649 = vmatpush.msra.mxu1 %v642_v41  ;;  %v631_v62 = vld [vmem:[#allocation11 + $0x10] sm:$0xff]  ;;  %v630_v3 = vld [vmem:[#allocation11 + $0x8] sm:$0xff]  ;;  %v605_v39 = vld [vmem:[%s1557_s26] sm:$0xff] }
  0x8c   : > { %892 = vmatpush.msra.mxu2 %v472_v7  ;;  %491 = vmatpush.msra.mxu0 %v472_v7  ;;  %v609_v40 = vld [vmem:[%s1557_s26 + $0x8] sm:$0xff] }
  0x8d   : > { %904 = vmatpush.msra.mxu3 %v641_v42  ;;  %650 = vmatpush.msra.mxu1 %v641_v42  ;;  %v616_v42 = vld [vmem:[%s1557_s26 + $0x30] sm:$0xff] }
  0x8e   : > { %893 = vmatpush.msra.mxu2 %v471_v8  ;;  %492 = vmatpush.msra.mxu0 %v471_v8 }
  0x8f   : > { %905 = vmatpush.msra.mxu3 %v640_v43  ;;  %651 = vmatpush.msra.mxu1 %v640_v43 }
  0x90   : > { %894 = vmatpush.msra.mxu2 %v470_v9  ;;  %493 = vmatpush.msra.mxu0 %v470_v9 }
  0x91   : > { %906 = vmatpush.msra.mxu3 %v639_v46  ;;  %652 = vmatpush.msra.mxu1 %v639_v46 }
  0x92   : > { %895 = vmatpush.msra.mxu2 %v469_v10  ;;  %494 = vmatpush.msra.mxu0 %v469_v10  ;;  %v629_v10 = vld [vmem:[#allocation11] sm:$0xff] }
  0x93   : > { %907 = vmatpush.msra.mxu3 %v638_v48  ;;  %653 = vmatpush.msra.mxu1 %v638_v48 }
  0x94   : > { %896 = vmatpush.msra.mxu2 %v468_v11  ;;  %495 = vmatpush.msra.mxu0 %v468_v11 }
  0x95   : > { %908 = vmatpush.msra.mxu3 %v637_v49  ;;  %654 = vmatpush.msra.mxu1 %v637_v49 }
  0x96   : > { %897 = vmatpush.msra.mxu2 %v467_v12  ;;  %496 = vmatpush.msra.mxu0 %v467_v12 }
  0x97   : > { %909 = vmatpush.msra.mxu3 %v636_v50  ;;  %655 = vmatpush.msra.mxu1 %v636_v50  ;;  %v622_v50 = vld [vmem:[%s1557_s26 + $0x38] sm:$0xff] }
  0x98   : > { %898 = vmatpush.msra.mxu2 %v466_v13  ;;  %497 = vmatpush.msra.mxu0 %v466_v13 }
  0x99   : > { %910 = vmatpush.msra.mxu3 %v635_v51  ;;  %656 = vmatpush.msra.mxu1 %v635_v51 }
  0x9a   : > { %899 = vmatpush.msra.mxu2 %v465_v14  ;;  %498 = vmatpush.msra.mxu0 %v465_v14 }
  0x9b   : > { %911 = vmatpush.msra.mxu3 %v634_v54  ;;  %657 = vmatpush.msra.mxu1 %v634_v54  ;;  %v615_v54 = vld [vmem:[%s1557_s26 + $0x10] sm:$0xff] }
  0x9c   : > { %900 = vmatpush.msra.mxu2 %v464_v15  ;;  %499 = vmatpush.msra.mxu0 %v464_v15 }
  0x9d   : > { %503 = vmatmul.f32.vlgmr.msra.gmra.mxu2 %v463_v16  ;;  %500 = vmatmul.f32.vlgmr.msra.gmra.mxu0 %v462_v17 }
  0x9e   : > { %912 = vmatpush.msra.mxu3 %v633_v56  ;;  %658 = vmatpush.msra.mxu1 %v633_v56 }
  0xa0   : > { %913 = vmatpush.msra.mxu3 %v632_v59  ;;  %659 = vmatpush.msra.mxu1 %v632_v59 }
  0xa2   : > { %914 = vmatpush.msra.mxu3 %v631_v62  ;;  %660 = vmatpush.msra.mxu1 %v631_v62 }
  0xa4   : > { %915 = vmatpush.msra.mxu3 %v630_v3  ;;  %661 = vmatpush.msra.mxu1 %v630_v3 }
  0xa6   : > { %916 = vmatpush.msra.mxu3 %v629_v10  ;;  %662 = vmatpush.msra.mxu1 %v629_v10 }
 0x11a   : > { %v501_v19 = vpop.f32.mrf.mxu0 }
 0x11b   : > { %v502_v21 = vadd.f32 %v1005_v18, %v501_v19 }
 0x11d   : > { %v509_v22 = vmul.f32 %v507_v20, %v502_v21  ;;  %v517_v30 = vmul.f32 %v515_v26, %v502_v21  ;;  %v533_v37 = vmul.f32 %v531_v35, %v502_v21  ;;  %v525_v38 = vmul.f32 %v523_v36, %v502_v21 }
 0x11f   : > { %511 = vadd.xlane.f32.xlu2 %v509_v22 }
 0x120   : > { %v504_v23 = vpop.f32.mrf.mxu2 }
 0x121   : > { %v505_v27 = vadd.f32 %v1005_v18, %v504_v23 }
 0x123   : > { %v526_v28 = vmul.f32 %v524_v24, %v505_v27  ;;  %v510_v29 = vmul.f32 %v508_v25, %v505_v27  ;;  %v534_v33 = vmul.f32 %v532_v31, %v505_v27  ;;  %v518_v34 = vmul.f32 %v516_v32, %v505_v27  ;;  %v606_v31 = vld [vmem:[%s1557_s26 + $0x20] sm:$0xff]  ;;  %v610_v32 = vld [vmem:[%s1557_s26 + $0x28] sm:$0xff] }
 0x125   : > { %529 = vadd.xlane.f32.xlu1 %v526_v28  ;;  %513 = vadd.xlane.f32.xlu0 %v510_v29 }
 0x127   : > { %519 = vadd.xlane.f32.xlu2 %v517_v30 }
 0x12d   : > { %537 = vadd.xlane.f32.xlu1 %v534_v33  ;;  %521 = vadd.xlane.f32.xlu0 %v518_v34 }
 0x135   : > { %535 = vadd.xlane.f32.xlu1 %v533_v37  ;;  %527 = vadd.xlane.f32.xlu0 %v525_v38 }
 0x192   : > { %v512_v47 = vpop.xlane.xlu2 %511 }
 0x198   : > { %v530_v44 = vpop.xlane.xlu1 %529  ;;  %v514_v45 = vpop.xlane.xlu0 %513 }
 0x19a   : > { %v520_v57 = vpop.xlane.xlu2 %519 }
 0x19b   : > { %v539_v61 = vmax.f32 %v512_v47, %v520_v57 }
 0x1a0   : > { %v538_v52 = vpop.xlane.xlu1 %537  ;;  %v522_v53 = vpop.xlane.xlu0 %521 }
 0x1a1   : > { %v540_v55 = vmax.f32 %v514_v45, %v522_v53 }
 0x1a3   : > { %v542_v58 = vmax.f32 %v540_v55, %v530_v44 }
 0x1a5   : > { %v544_v60 = vmax.f32 %v542_v58, %v538_v52 }
 0x1a7   : > { %v546_v63 = vsub.f32 %v514_v45, %v544_v60  ;;  %v552_v0 = vsub.f32 %v522_v53, %v544_v60  ;;  %v558_v1 = vsub.f32 %v530_v44, %v544_v60  ;;  %v564_v4 = vsub.f32 %v538_v52, %v544_v60 }
 0x1a8   : > { %v528_v2 = vpop.xlane.xlu0 %527  ;;  %v536_v9 = vpop.xlane.xlu1 %535 }
 0x1a9   : > { %v549_v5 = vmul.f32 1.442695, %v546_v63  ;;  %v555_v6 = vmul.f32 1.442695, %v552_v0  ;;  %v541_v7 = vmax.f32 %v539_v61, %v528_v2  ;;  %v561_v8 = vmul.f32 1.442695, %v558_v1 }
 0x1aa   : > { %v567_v12 = vmul.f32 1.442695, %v564_v4  ;;  %v621_v4 = vld [vmem:[%s1557_s26 + $0x18] sm:$0xff] }
 0x1ab   : > { %1006 = vpow2.f32 %v549_v5  ;;  %v543_v11 = vmax.f32 %v541_v7, %v536_v9 }
 0x1ac   : > { %1008 = vpow2.f32 %v555_v6 }
 0x1ad   : > { %v545_v13 = vsub.f32 %v512_v47, %v543_v11  ;;  %v551_v14 = vsub.f32 %v520_v57, %v543_v11  ;;  %v557_v15 = vsub.f32 %v528_v2, %v543_v11  ;;  %1010 = vpow2.f32 %v561_v8 }
 0x1ae   : > { %v563_v16 = vsub.f32 %v536_v9, %v543_v11  ;;  %1012 = vpow2.f32 %v567_v12 }
 0x1af   : > { %v547_v17 = vmul.f32 1.442695, %v545_v13  ;;  %v553_v18 = vmul.f32 1.442695, %v551_v14  ;;  %v559_v19 = vmul.f32 1.442695, %v557_v15 }
 0x1b0   : > { %v565_v22 = vmul.f32 1.442695, %v563_v16  ;;  %v645_v15 = vld [vmem:[%s400_s17] sm:$0xff]  ;;  %v646_v16 = vld [vmem:[%s400_s17 + $0x8] sm:$0xff] }
 0x1b1   : > { %v1007_v20 = vpop.eup %1006  ;;  %1014 = vpow2.f32 %v547_v17 }
 0x1b2   : > { %v1009_v21 = vpop.eup %1008  ;;  %1016 = vpow2.f32 %v553_v18  ;;  %v608_v36 = vmul.f32 %v1007_v20, %v606_v31 }
 0x1b3   : > { %v570_v23 = vadd.f32 %v1009_v21, %v1007_v20  ;;  %v1011_v24 = vpop.eup %1010  ;;  %1018 = vpow2.f32 %v559_v19  ;;  %v612_v37 = vmul.f32 %v1009_v21, %v610_v32 }
 0x1b4   : > { %v1013_v26 = vpop.eup %1012  ;;  %1020 = vpow2.f32 %v565_v22  ;;  %v618_v48 = vmul.f32 %v1011_v24, %v616_v42 }
 0x1b5   : > { %v572_v25 = vadd.f32 %v1011_v24, %v570_v23  ;;  %v614_v44 = vadd.f32 %v612_v37, %v608_v36  ;;  %v624_v58 = vmul.f32 %v1013_v26, %v622_v50 }
 0x1b7   : > { %v1015_v27 = vpop.eup %1014  ;;  %v574_v28 = vadd.f32 %v1013_v26, %v572_v25  ;;  %v620_v53 = vadd.f32 %v618_v48, %v614_v44 }
 0x1b8   : > { %v1017_v29 = vpop.eup %1016  ;;  %v607_v45 = vmul.f32 %v1015_v27, %v605_v39 }
 0x1b9   : > { %v569_v30 = vadd.f32 %v1017_v29, %v1015_v27  ;;  %1022 = vrcp.f32 %v574_v28  ;;  %v1019_v33 = vpop.eup %1018  ;;  %v611_v46 = vmul.f32 %v1017_v29, %v609_v40  ;;  %v601_v49 = vand.u32 2147483648, %v574_v28 }
 0x1ba   : > { %v1021_v35 = vpop.eup %1020  ;;  %v599_v52 = vand.u32 2147483647, %v574_v28  ;;  %vm595_vm1 = vweird.f32 %v574_v28  ;;  %v617_v61 = vmul.f32 %v1019_v33, %v615_v54  ;;  %v626_v63 = vadd.f32 %v624_v58, %v620_v53 }
 0x1bb   : > { %v571_v34 = vadd.f32 %v1019_v33, %v569_v30  ;;  %v613_v56 = vadd.f32 %v611_v46, %v607_v45  ;;  %v602_v60 = vor.u32 1.1754944e-38, %v601_v49  ;;  %v623_v9 = vmul.f32 %v1021_v35, %v621_v4 }
 0x1bc   : > { %vm600_vm3 = vcmp.eq.f32.partialorder %v599_v52, 8.507059e+37 }
 0x1bd   : > { %v573_v38 = vadd.f32 %v1021_v35, %v571_v34  ;;  %v619_v3 = vadd.f32 %v617_v61, %v613_v56 }
 0x1bf   : > { %v1023_v41 = vpop.eup %1022  ;;  %1024 = vrcp.f32 %v573_v38  ;;  %v586_v2 = vand.u32 2147483648, %v573_v38  ;;  %v584_v7 = vand.u32 2147483647, %v573_v38  ;;  %vm580_vm5 = vweird.f32 %v573_v38 }
 0x1c0   : > { %v591_v43 = vmul.f32 %v1023_v41, %v574_v28  ;;  %vm596_vm0 = vweird.f32 %v1023_v41  ;;  %v625_v12 = vadd.f32 %v623_v9, %v619_v3 }
 0x1c1   : > { %vm597_vm2 = vmor %vm595_vm1, %vm596_vm0  ;;  %v587_v10 = vor.u32 1.1754944e-38, %v586_v2  ;;  %vm585_vm7 = vcmp.eq.f32.partialorder %v584_v7, 8.507059e+37 }
 0x1c2   : > { %v592_v47 = vsub.f32 1.0, %v591_v43 }
 0x1c4   : > { %v593_v51 = vmul.f32 %v1023_v41, %v592_v47 }
 0x1c5   : > { %v1025_v55 = vpop.eup %1024 }
 0x1c6   : > { %v594_v57 = vadd.f32 %v1023_v41, %v593_v51  ;;  %v576_v59 = vmul.f32 %v1025_v55, %v573_v38  ;;  %vm581_vm4 = vweird.f32 %v1025_v55 }
 0x1c7   : > { %vm582_vm6 = vmor %vm580_vm5, %vm581_vm4 }
 0x1c8   : > { %v598_v62 = vsel %vm597_vm2, %v1023_v41, %v594_v57  ;;  %v577_v0 = vsub.f32 1.0, %v576_v59 }
 0x1c9   : > { %v603_v1 = vsel %vm600_vm3, %v602_v60, %v598_v62 }
 0x1ca   : > { %v628_v5 = vmul.f32 %v626_v63, %v603_v1  ;;  %v578_v6 = vmul.f32 %v1025_v55, %v577_v0 }
 0x1cc   : > { %666 = vmatmul.f32.vlgmr.msra.gmra.mxu3 %v628_v5  ;;  %v579_v8 = vadd.f32 %v1025_v55, %v578_v6 }
 0x1ce   : > { %v583_v11 = vsel %vm582_vm6, %v1025_v55, %v579_v8 }
 0x1cf   : > { %v588_v13 = vsel %vm585_vm7, %v587_v10, %v583_v11 }
 0x1d0   : > { %v627_v14 = vmul.f32 %v625_v12, %v588_v13 }
 0x1d2   : > { %663 = vmatmul.f32.vlgmr.msra.gmra.mxu1 %v627_v14 }
 0x24f   : > { %v664_v17 = vpop.f32.mrf.mxu1  ;;  %v667_v18 = vpop.f32.mrf.mxu3 }
 0x250   : > { %v665_v19 = vadd.f32 %v664_v17, %v645_v15  ;;  %v668_v20 = vadd.f32 %v667_v18, %v646_v16 }
 0x252   : > { %670 = vst [vmem:[%s456_s15] sm:$0xff] %v665_v19 }
 0x253   : > { %671 = vst [vmem:[%s456_s15 + $0x8] sm:$0xff] %v668_v20 }
 0x254   : > { %1233 = shalt.err (!%p1230_p2)
}
 0x255   : > { %s1296_s4 = smov 128   ;;  %s1297_s11 = smov 8  }
 0x256   : > { %933 = dma.vmem_to_hbm [thread:$0]  (%p1414_p7), %s686_s6, 256, %s688_s29, %s673_s28, %s1296_s4, %s1296_s4, %s1297_s11  }
 0x257 PF: > { %s1686_s24 = sld [smem:[#allocation20_spill]]  ;;  %p1688_p13 = scmp.ge.s32.totalorder %s1288_s27, 2 }
 0x259   : > { %p956_p8 = pnand %p1688_p13, %p1373_p6 }
 0x25b   : > { %p957_p9 = pneg %p956_p8 }
 0x25d   : > { %s702_s10 = sand.u32 1, %s1686_s24  }
 0x25e   : > { %s703_s17 = scalar_lea.sflag [#allocation4], %s702_s10 }
 0x25f   : > { %1271 = dma.done.wait (%p957_p9), %s703_s17, 256  }
 0x260   : > { %1273 = vsyncadd (%p957_p9), %s703_s17, 4294967040  ;;  %s1689_s27 = sld [smem:[#allocation23_spill]]  ;;  %s1692_s24 = smov %s1280_s25 }
 0x261   : > { %s1690_s30 = sld [smem:[#allocation21_spill]] }
 0x262   : > { %s1691_s26 = sld [smem:[#allocation24_spill]] }
 0x266   : > { %p27_p12 = scmp.ge.s32.totalorder %s1689_s27, 4  }
 0x267   : > { %s1693_s25 = smov %s1690_s30 }
 0x268   :  { %29 = sbr.rel (!%p27_p12) target bundleno = 14 (0xe), region = 138 }
 0x26d   :  { %709 = vsyncpa [#allocation3], 1 }
 0x26e   :  { %711 = vsyncpa [#allocation3 + $0x1], 1 }
 0x26f   :  { %712 = vsyncpa [#allocation6], 1 }
 0x270   :  { %714 = vsyncpa [#allocation6 + $0x1], 1 }
 0x271   :  { %715 = vsyncpa [#allocation9], 1 }
 0x272   :  { %717 = vsyncpa [#allocation9 + $0x1], 1 }
 0x273   :  { %718 = vsyncpa [#allocation12], 1 }
 0x274   :  { %719 = vsyncpa [#allocation4], 1 }
 0x275   :  { %721 = vsyncpa [#allocation4 + $0x1], 1 }

// kernel: tpu_custom_call.1
= control target key start
LH: loop header
LB: loop body
LE: loop exit
PB: predicated region body
PF: predicated region fallthrough
CT: control target
= control target key end

     0   :  { %s1633_s0 = inlined_call_operand.hbm [shape: f32[26,128], index: 0, kind: input, shape index: {}]   ;;  %s1634_s1 = inlined_call_operand.hbm [shape: f32[26,512], index: 1, kind: input, shape index: {}]   ;;  %s1635_s2 = inlined_call_operand.hbm [shape: f32[26,512], index: 2, kind: input, shape index: {}]   ;;  %s1636_s3 = inlined_call_operand.hbm [shape: f32[26,128], index: 3, kind: input, shape index: {}]   ;;  %s1637_s4 = inlined_call_operand.hbm [shape: f32[128,128], index: 4, kind: input, shape index: {}]   ;;  %s1638_s5 = inlined_call_operand.vmem [shape: f32[1,128], index: 5, kind: input, shape index: {}]   ;;  %s1639_s6 = inlined_call_operand.hbm [shape: f32[128,128], index: 6, kind: input, shape index: {}]   ;;  %s1640_s7 = inlined_call_operand.hbm [shape: f32[26,128], index: 7, kind: output, shape index: {}]  }
   0x1   :  { %1657 = sst [smem:[#allocation26_spill]] %s1634_s1 }
   0x2   :  { %1658 = sst [smem:[#allocation27_spill]] %s1637_s4 }
   0x3   :  { %1659 = sst [smem:[#allocation28_spill]] %s1639_s6 }
   0x4   :  { %12 = vsyncpa [#allocation3], 0 }
   0x5   :  { %14 = vsyncpa [#allocation3 + $0x1], 0 }
   0x6   :  { %15 = vsyncpa [#allocation6], 0 }
   0x7   :  { %17 = vsyncpa [#allocation6 + $0x1], 0 }
   0x8   :  { %18 = vsyncpa [#allocation9], 0 }
   0x9   :  { %20 = vsyncpa [#allocation9 + $0x1], 0 }
   0xa   :  { %21 = vsyncpa [#allocation12], 0 }
   0xb   :  { %22 = vsyncpa [#allocation4], 0 }
   0xc   :  { %24 = vsyncpa [#allocation4 + $0x1], 0  ;;  %s1338_s24 = smov 0   ;;  %s1340_s25 = smov 0  }
   0xd   :  { %s1342_s26 = smov 0   ;;  %s1344_s27 = smov 0  }
   0xe LB: > { %1660 = sst [smem:[#allocation20_spill]] %s1276_s24  ;;  %s1359_s28 = sadd.s32 4294967295, %s1288_s27   ;;  %s1288_s27 = sphi %s1344_s27, %s1689_s27   ;;  %s1284_s26 = sphi %s1342_s26, %s1691_s26   ;;  %s1280_s25 = sphi %s1340_s25, %s1693_s25   ;;  %s1276_s24 = sphi %s1338_s24, %s1692_s24  }
   0xf   : > { %1661 = sst [smem:[#allocation21_spill]] %s1284_s26  ;;  %s846_s29 = sadd.s32 4294967294, %s1288_s27  }
  0x10   : > { %p50_p0 = scmp.ne.s32.totalorder %s1280_s25, %s1276_s24  ;;  %p1647_p1 = scmp.eq.s32.totalorder %s1359_s28, 0 }
  0x11   : > { %p215_p2 = scmp.eq.s32.totalorder %s1359_s28, 1  ;;  %p221_p3 = scmp.eq.s32.totalorder %s846_s29, 1 }
  0x12   : > { %p1368_p4 = por %p1647_p1, %p50_p0  ;;  %p847_p5 = scmp.ge.s32.totalorder %s1288_s27, 1 }
  0x13   : > { %p1373_p6 = por %p221_p3, %p50_p0  ;;  %p228_p7 = scmp.lt.s32.totalorder %s1288_s27, 3 }
  0x14   : > { %s1665_s4 = sld [smem:[#allocation27_spill]]  ;;  %s1290_s13 = smov [#allocation10]  }
  0x15   : > { %s1663_s8 = scalar_select %p1373_p6, 1, 0 }
  0x16   : > { %p1381_p8 = pnand %p847_p5, %p228_p7  ;;  %s241_s14 = sshll.u32 %s1290_s13, 4  ;;  %s242_s14 = int_to_ptr.vmem [resolvable:$true] %s241_s14 }
  0x17   : > { %1664 = sst [smem:[#allocation22_spill]] %s1663_s8  ;;  %s1395_s16 = sadd.s32 1, %s1288_s27  }
  0x18   : > { %p935_p9 = pneg %p1381_p8  ;;  %1668 = sst [smem:[#allocation23_spill]] %s1395_s16 }
  0x19   : > { %s1641_s17 = smov 128   ;;  %s1643_s18 = smov 8  }
  0x1a   : > { %s239_s11 = sshll.u32 %s1665_s4, 4  ;;  %p1389_p10 = pnand %p935_p9, %p1647_p1  ;;  %s240_s11 = int_to_ptr.hbm [resolvable:$true] %s239_s11 }
  0x1b   : > { %s34_s19 = ssub.s32 %s1288_s27, %s1395_s16  ;;  %s37_s20 = sadd.s32 1, %s1284_s26 }
  0x1c   : > { %938 = dma.hbm_to_vmem [thread:$0]  (!%p1389_p10), %s240_s11, 2048, %s242_s14, [#allocation9], %s1641_s17, %s1641_s17, %s1643_s18  }
  0x1d   : > { %p35_p12 = scmp.eq.s32.totalorder %s34_s19, 0  ;;  %p44_p13 = scmp.ne.s32.totalorder %s1284_s26, %s1280_s25 }
  0x1e   : > { %p45_p0 = scmp.eq.s32.totalorder %s1288_s27, 0  ;;  %p961_p3 = scmp.lt.s32.totalorder %s1288_s27, 2 }
  0x1f   : > { %s1410_s21 = scalar_select %p35_p12, %s1284_s26, %s37_s20  }
  0x20   : > { %p46_p5 = por %p45_p0, %p44_p13  ;;  %p1414_p7 = por %p215_p2, %p44_p13 }
  0x21   : > { %1669 = sst [smem:[#allocation24_spill]] %s1410_s21  ;;  %s1419_s23 = sand.u32 1, %s1284_s26  }
  0x22   : > { %s1670_s22 = scalar_select %p1414_p7, 1, 0 }
  0x23   : > { %s1648_s29 = sand.u32 1, %s1288_s27   ;;  %p1422_p9 = pnand %p961_p3, %p46_p5 }
  0x24   : > { %1671 = sst [smem:[#allocation25_spill]] %s1670_s22  ;;  %s1646_s10 = sshll.u32 %s1419_s23, 6 }
  0x25   : > { %s880_s11 = sshll.u32 %s1288_s27, 6  ;;  %s1673_s1 = sld [smem:[#allocation26_spill]] }
  0x26   : > { %s298_s20 = scalar_lea.vmem [#allocation5], %s1646_s10  ;;  %s1435_s4 = scalar_lea.sflag [#allocation6], %s1648_s29 }
  0x27   : > { %s307_s17 = sshll.u32 %s298_s20, 4  ;;  %p1060_p12 = pneg %p1422_p9  ;;  %s308_s17 = int_to_ptr.vmem [resolvable:$true] %s307_s17 }
  0x2b   : > { %s304_s19 = scalar_lea.hbm %s1673_s1, %s880_s11  ;;  %s1063_s20 = scalar_lea.hbm %s1673_s1, 128 }
  0x2c   : > { %s305_s18 = sshll.u32 %s304_s19, 4  ;;  %s306_s18 = int_to_ptr.hbm [resolvable:$true] %s305_s18 }
  0x2d   : > { %s1056_s21 = sshra.s32 %s306_s18, 4  ;;  %s1057_s21 = int_to_ptr.hbm [resolvable:$true] %s1056_s21 }
  0x2e   : > { %s1058_s26 = scalar_lea.hbm %s1057_s21, 64  ;;  %p1064_p3 = scmp.lt.s32.totalorder %s1057_s21, %s1673_s1 }
  0x2f   : > { %p1059_p2 = scmp.ne.s32.totalorder %s1057_s21, %s1058_s26  ;;  %p1065_p5 = scmp.lt.s32.totalorder %s1063_s20, %s1058_s26 }
  0x31   : > { %p1061_p13 = pnand %p1060_p12, %p1059_p2  ;;  %p1066_p11 = por %p1065_p5, %p1064_p3 }
  0x33   : > { %p1062_p0 = pneg %p1061_p13 }
  0x35   : > { %p1067_p1 = pnand %p1066_p11, %p1062_p0 }
  0x37   : > { %1070 = shalt.err (!%p1067_p1)
}
  0x38   : > { %s1655_s29 = smov 512   ;;  %s1656_s16 = smov 32  }
  0x39   : > { %948 = dma.hbm_to_vmem [thread:$0]  (!%p1422_p9), %s306_s18, 1024, %s308_s17, %s1435_s4, %s1655_s29, %s1655_s29, %s1656_s16  }
  0x3a   : > { %s327_s26 = scalar_lea.hbm %s1635_s2, %s880_s11  ;;  %s1674_s21 = sshll.u32 %s1419_s23, 6 }
  0x3b   : > { %s321_s14 = scalar_lea.vmem [#allocation7], %s1674_s21  ;;  %s328_s19 = sshll.u32 %s327_s26, 4  ;;  %s1461_s19 = int_to_ptr.hbm [resolvable:$true] %s328_s19 }
  0x3c   : > { %s330_s20 = sshll.u32 %s321_s14, 4  ;;  %s1675_s6 = sld [smem:[#allocation28_spill]]  ;;  %s1459_s20 = int_to_ptr.vmem [resolvable:$true] %s330_s20 }
  0x3d   : > { %s1295_s22 = smov [#allocation11]   ;;  %s1676_s18 = smov 8  }
  0x3e   : > { %s258_s17 = sshll.u32 %s1295_s22, 4  ;;  %s1677_s11 = smov 128   ;;  %s259_s17 = int_to_ptr.vmem [resolvable:$true] %s258_s17 }
  0x3f   : > { %s851_s13 = sshll.u32 %s1419_s23, 4  ;;  %s878_s10 = sshll.u32 %s1288_s27, 4 }
  0x40   : > { %s281_s14 = scalar_lea.hbm %s1633_s0, %s878_s10  ;;  %s276_s16 = scalar_lea.vmem [#allocation2], %s851_s13 }
  0x41   : > { %s282_s29 = sshll.u32 %s281_s14, 4  ;;  %s284_s1 = sshll.u32 %s276_s16, 4  ;;  %s283_s29 = int_to_ptr.hbm [resolvable:$true] %s282_s29  ;;  %s285_s1 = int_to_ptr.vmem [resolvable:$true] %s284_s1 }
  0x42   : > { %s256_s24 = sshll.u32 %s1675_s6, 4  ;;  %s273_s8 = scalar_lea.sflag [#allocation3], %s1419_s23  ;;  %s257_s24 = int_to_ptr.hbm [resolvable:$true] %s256_s24 }
  0x43   : > { %941 = dma.hbm_to_vmem [thread:$0]  (!%p1389_p10), %s257_s24, 2048, %s259_s17, [#allocation12], %s1677_s11, %s1677_s11, %s1676_s18  }
  0x44   : > { %s1116_s22 = sshra.s32 %s283_s29, 4  ;;  %s1123_s17 = scalar_lea.hbm %s1633_s0, 32  ;;  %s1117_s22 = int_to_ptr.hbm [resolvable:$true] %s1116_s22 }
  0x45   : > { %s1118_s6 = scalar_lea.hbm %s1117_s22, 16  ;;  %p1124_p2 = scmp.lt.s32.totalorder %s1117_s22, %s1633_s0 }
  0x46   : > { %p1119_p1 = scmp.ne.s32.totalorder %s1117_s22, %s1118_s6  ;;  %p1125_p13 = scmp.lt.s32.totalorder %s1123_s17, %s1118_s6 }
  0x48   : > { %p1121_p11 = pnand %p1119_p1, %p1060_p12  ;;  %p1126_p0 = por %p1125_p13, %p1124_p2 }
  0x4a   : > { %p1122_p10 = pneg %p1121_p11 }
  0x4c   : > { %p1127_p3 = pnand %p1126_p0, %p1122_p10 }
  0x4e   : > { %1130 = shalt.err (!%p1127_p3)
}
  0x4f   : > { %945 = dma.hbm_to_vmem [thread:$0]  (!%p1422_p9), %s283_s29, 256, %s285_s1, %s273_s8, %s1677_s11, %s1677_s11, %s1676_s18  }
  0x50   : > { %s349_s14 = scalar_lea.hbm %s1636_s3, %s878_s10  ;;  %s344_s15 = scalar_lea.vmem [#allocation8], %s851_s13 }
  0x51   : > { %s350_s24 = sshll.u32 %s349_s14, 4  ;;  %s352_s26 = sshll.u32 %s344_s15, 4  ;;  %s1494_s24 = int_to_ptr.hbm [resolvable:$true] %s350_s24  ;;  %s1496_s26 = int_to_ptr.vmem [resolvable:$true] %s352_s26 }
  0x52   : > { %s1146_s6 = sshra.s32 %s1461_s19, 4  ;;  %s1153_s8 = scalar_lea.hbm %s1635_s2, 128  ;;  %s1147_s6 = int_to_ptr.hbm [resolvable:$true] %s1146_s6 }
  0x53   : > { %s1148_s22 = scalar_lea.hbm %s1147_s6, 64  ;;  %p1154_p10 = scmp.lt.s32.totalorder %s1147_s6, %s1635_s2 }
  0x54   : > { %p1149_p5 = scmp.ne.s32.totalorder %s1147_s6, %s1148_s22  ;;  %p1155_p2 = scmp.lt.s32.totalorder %s1153_s8, %s1148_s22 }
  0x56   : > { %p1151_p1 = pnand %p1149_p5, %p1060_p12  ;;  %p1156_p13 = por %p1155_p2, %p1154_p10 }
  0x58   : > { %p1152_p11 = pneg %p1151_p1 }
  0x5a   : > { %p1157_p0 = pnand %p1156_p13, %p1152_p11 }
  0x5c   : > { %1160 = shalt.err (!%p1157_p0)
}
  0x5d   : > { %s1678_s13 = smov 32   ;;  %s1679_s21 = smov 512  }
  0x5e   : > { %951 = dma.hbm_to_vmem [thread:$0]  (!%p1422_p9), %s1461_s19, 1024, %s1459_s20, %s1435_s4, %s1679_s21, %s1679_s21, %s1678_s13  }
  0x5f   : > { %s1680_s16 = sand.u32 1, %s1288_s27   ;;  %s1176_s14 = sshra.s32 %s1494_s24, 4  ;;  %s1177_s14 = int_to_ptr.hbm [resolvable:$true] %s1176_s14 }
  0x60   : > { %s341_s23 = scalar_lea.sflag [#allocation9], %s1680_s16  ;;  %s1178_s15 = scalar_lea.hbm %s1177_s14, 16 }
  0x61   : > { %p1179_p3 = scmp.ne.s32.totalorder %s1177_s14, %s1178_s15  ;;  %s1183_s29 = scalar_lea.hbm %s1636_s3, 32 }
  0x62   : > { %p1184_p11 = scmp.lt.s32.totalorder %s1177_s14, %s1636_s3  ;;  %p1185_p10 = scmp.lt.s32.totalorder %s1183_s29, %s1178_s15 }
  0x63   : > { %p1181_p5 = pnand %p1179_p3, %p1060_p12 }
  0x64   : > { %p1186_p2 = por %p1185_p10, %p1184_p11 }
  0x65   : > { %p1182_p1 = pneg %p1181_p5 }
  0x67   : > { %p1187_p13 = pnand %p1186_p2, %p1182_p1 }
  0x69   : > { %1190 = shalt.err (!%p1187_p13)
}
  0x6a   : > { %954 = dma.hbm_to_vmem [thread:$0]  (!%p1422_p9), %s1494_s24, 256, %s1496_s26, %s341_s23, %s1677_s11, %s1677_s11, %s1676_s18  }
  0x6b   : > { %364 = sbr.rel (%p1381_p8) target bundleno = 599 (0x257), region = 48  ;;  %s1538_s4 = sand.u32 (!%p1381_p8), 1, %s1280_s25  }
  0x6c   : > { %s1541_s20 = sshll.u32 (!%p1381_p8), %s1538_s4, 4  ;;  %s367_s19 = scalar_lea.sflag (!%p1381_p8), [#allocation3], %s1538_s4 }
  0x6d   : > { %s370_s9 = scalar_lea.vmem (!%p1381_p8), [#allocation2], %s1541_s20 }
  0x70   : > { %1251 = dma.done.wait (%p1368_p4), %s367_s19, 256  }
  0x71   : > { %1253 = vsyncadd (%p1368_p4), %s367_s19, 4294967040  ;;  %s376_s12 = sand.u32 1, %s1359_s28   ;;  %s867_s18 = sshll.u32 %s1538_s4, 6 }
  0x72   : > { %s377_s11 = scalar_lea.sflag [#allocation6], %s376_s12  ;;  %s1551_s24 = scalar_lea.vmem [#allocation5], %s867_s18 }
  0x73   : > { %1255 = dma.done.wait (%p1368_p4), %s377_s11, 2048  }
  0x74   : > { %1257 = vsyncadd (%p1368_p4), %s377_s11, 4294965248  ;;  %s1557_s26 = scalar_lea.vmem [#allocation7], %s867_s18  ;;  %s397_s10 = scalar_lea.sflag [#allocation9], %s376_s12 }
  0x75   : > { %s400_s17 = scalar_lea.vmem [#allocation8], %s1541_s20 }
  0x76   : > { %1259 = dma.done.wait (%p1368_p4), %s397_s10, 256  }
  0x77   : > { %1261 = vsyncadd (%p1368_p4), %s397_s10, 4294967040  ;;  %p1681_p8 = scmp.eq.s32.totalorder %s1359_s28, 0 }
  0x79   : > { %1263 = dma.done.wait (%p1681_p8), [#allocation9], 2048   ;;  %p1682_p9 = pmov %p1681_p8 }
  0x7a   : > { %p1683_p12 = pmov %p1681_p8 }
  0x7b   : > { %1265 = vsyncadd (%p1682_p9), [#allocation9], 4294965248 }
  0x7c   : > { %1267 = dma.done.wait (%p1683_p12), [#allocation12], 2048   ;;  %p1684_p0 = pmov %p1681_p8 }
  0x7d   : > { %v479_v0 = vld [vmem:[#allocation10 + $0x78] sm:$0xff]  ;;  %v478_v1 = vld [vmem:[#allocation10 + $0x70] sm:$0xff]  ;;  %v477_v2 = vld [vmem:[#allocation10 + $0x68] sm:$0xff]  ;;  %s884_s21 = sshll.u32 %s1359_s28, 4  ;;  %s456_s15 = scalar_lea.vmem [#allocation13], %s1541_s20 }
  0x7e   : > { %1269 = vsyncadd (%p1684_p0), [#allocation12], 4294965248  ;;  %885 = vmatpush.msra.mxu2 %v479_v0  ;;  %484 = vmatpush.msra.mxu0 %v479_v0  ;;  %v476_v3 = vld [vmem:[#allocation10 + $0x60] sm:$0xff]  ;;  %v475_v4 = vld [vmem:[#allocation10 + $0x58] sm:$0xff]  ;;  %s684_s14 = scalar_lea.hbm %s1640_s7, %s884_s21  ;;  %s685_s6 = sshll.u32 %s456_s15, 4  ;;  %s686_s6 = int_to_ptr.vmem [resolvable:$true] %s685_s6 }
  0x7f   : > { %v474_v5 = vld [vmem:[#allocation10 + $0x50] sm:$0xff]  ;;  %v473_v6 = vld [vmem:[#allocation10 + $0x48] sm:$0xff]  ;;  %v472_v7 = vld [vmem:[#allocation10 + $0x40] sm:$0xff]  ;;  %s687_s29 = sshll.u32 %s684_s14, 4  ;;  %s673_s28 = scalar_lea.sflag [#allocation4], %s1538_s4  ;;  %s688_s29 = int_to_ptr.hbm [resolvable:$true] %s687_s29 }
  0x80   : > { %886 = vmatpush.msra.mxu2 %v478_v1  ;;  %485 = vmatpush.msra.mxu0 %v478_v1  ;;  %v471_v8 = vld [vmem:[#allocation10 + $0x38] sm:$0xff]  ;;  %v470_v9 = vld [vmem:[#allocation10 + $0x30] sm:$0xff]  ;;  %v469_v10 = vld [vmem:[#allocation10 + $0x28] sm:$0xff]  ;;  %s1220_s1 = sshra.s32 %s688_s29, 4  ;;  %s1221_s1 = int_to_ptr.hbm [resolvable:$true] %s1220_s1 }
  0x81   : > { %v468_v11 = vld [vmem:[#allocation10 + $0x20] sm:$0xff]  ;;  %v467_v12 = vld [vmem:[#allocation10 + $0x18] sm:$0xff]  ;;  %v466_v13 = vld [vmem:[#allocation10 + $0x10] sm:$0xff]  ;;  %s1222_s8 = scalar_lea.hbm %s1221_s1, 16  ;;  %p1227_p1 = scmp.lt.s32.totalorder %s1221_s1, %s1640_s7 }
  0x82   : > { %887 = vmatpush.msra.mxu2 %v477_v2  ;;  %486 = vmatpush.msra.mxu0 %v477_v2  ;;  %v465_v14 = vld [vmem:[#allocation10 + $0x8] sm:$0xff]  ;;  %v464_v15 = vld [vmem:[#allocation10] sm:$0xff]  ;;  %v524_v24 = vld [vmem:[%s1551_s24 + $0x30] sm:$0xff]  ;;  %p1223_p4 = scmp.ne.s32.totalorder %s1221_s1, %s1222_s8 }
  0x83   : > { %v463_v16 = vld [vmem:[%s370_s9 + $0x8] sm:$0xff]  ;;  %v462_v17 = vld [vmem:[%s370_s9] sm:$0xff]  ;;  %s1226_s9 = scalar_lea.hbm %s1640_s7, 32 }
  0x84   : > { %888 = vmatpush.msra.mxu2 %v476_v3  ;;  %487 = vmatpush.msra.mxu0 %v476_v3  ;;  %v1005_v18 = vld [vmem:[%s1638_s5] ss:$0 sm:$0xff]  ;;  %v515_v26 = vld [vmem:[%s1551_s24 + $0x8] sm:$0xff]  ;;  %v532_v31 = vld [vmem:[%s1551_s24 + $0x38] sm:$0xff]  ;;  %p1224_p3 = pnand %p1223_p4, %p1414_p7  ;;  %p1228_p11 = scmp.lt.s32.totalorder %s1226_s9, %s1222_s8 }
  0x85   : > { %v507_v20 = vld [vmem:[%s1551_s24] sm:$0xff]  ;;  %v516_v32 = vld [vmem:[%s1551_s24 + $0x28] sm:$0xff]  ;;  %v531_v35 = vld [vmem:[%s1551_s24 + $0x18] sm:$0xff] }
  0x86   : > { %889 = vmatpush.msra.mxu2 %v475_v4  ;;  %488 = vmatpush.msra.mxu0 %v475_v4  ;;  %v508_v25 = vld [vmem:[%s1551_s24 + $0x20] sm:$0xff]  ;;  %v523_v36 = vld [vmem:[%s1551_s24 + $0x10] sm:$0xff]  ;;  %v644_v39 = vld [vmem:[#allocation11 + $0x78] sm:$0xff]  ;;  %p1225_p5 = pneg %p1224_p3  ;;  %p1229_p10 = por %p1228_p11, %p1227_p1 }
  0x87   : > { %901 = vmatpush.msra.mxu3 %v644_v39  ;;  %647 = vmatpush.msra.mxu1 %v644_v39  ;;  %v643_v40 = vld [vmem:[#allocation11 + $0x70] sm:$0xff]  ;;  %v642_v41 = vld [vmem:[#allocation11 + $0x68] sm:$0xff]  ;;  %v641_v42 = vld [vmem:[#allocation11 + $0x60] sm:$0xff] }
  0x88   : > { %890 = vmatpush.msra.mxu2 %v474_v5  ;;  %489 = vmatpush.msra.mxu0 %v474_v5  ;;  %v640_v43 = vld [vmem:[#allocation11 + $0x58] sm:$0xff]  ;;  %v639_v46 = vld [vmem:[#allocation11 + $0x50] sm:$0xff]  ;;  %v638_v48 = vld [vmem:[#allocation11 + $0x48] sm:$0xff]  ;;  %p1230_p2 = pnand %p1229_p10, %p1225_p5 }
  0x89   : > { %902 = vmatpush.msra.mxu3 %v643_v40  ;;  %648 = vmatpush.msra.mxu1 %v643_v40  ;;  %v637_v49 = vld [vmem:[#allocation11 + $0x40] sm:$0xff]  ;;  %v636_v50 = vld [vmem:[#allocation11 + $0x38] sm:$0xff]  ;;  %v635_v51 = vld [vmem:[#allocation11 + $0x30] sm:$0xff] }
  0x8a   : > { %891 = vmatpush.msra.mxu2 %v473_v6  ;;  %490 = vmatpush.msra.mxu0 %v473_v6  ;;  %v634_v54 = vld [vmem:[#allocation11 + $0x28] sm:$0xff]  ;;  %v633_v56 = vld [vmem:[#allocation11 + $0x20] sm:$0xff]  ;;  %v632_v59 = vld [vmem:[#allocation11 + $0x18] sm:$0xff] }
  0x8b   : > { %903 = vmatpush.msra.mxu3 %v642_v41  ;;  %649 = vmatpush.msra.mxu1 %v642_v41  ;;  %v631_v62 = vld [vmem:[#allocation11 + $0x10] sm:$0xff]  ;;  %v630_v3 = vld [vmem:[#allocation11 + $0x8] sm:$0xff]  ;;  %v605_v39 = vld [vmem:[%s1557_s26] sm:$0xff] }
  0x8c   : > { %892 = vmatpush.msra.mxu2 %v472_v7  ;;  %491 = vmatpush.msra.mxu0 %v472_v7  ;;  %v609_v40 = vld [vmem:[%s1557_s26 + $0x8] sm:$0xff] }
  0x8d   : > { %904 = vmatpush.msra.mxu3 %v641_v42  ;;  %650 = vmatpush.msra.mxu1 %v641_v42  ;;  %v616_v42 = vld [vmem:[%s1557_s26 + $0x30] sm:$0xff] }
  0x8e   : > { %893 = vmatpush.msra.mxu2 %v471_v8  ;;  %492 = vmatpush.msra.mxu0 %v471_v8 }
  0x8f   : > { %905 = vmatpush.msra.mxu3 %v640_v43  ;;  %651 = vmatpush.msra.mxu1 %v640_v43 }
  0x90   : > { %894 = vmatpush.msra.mxu2 %v470_v9  ;;  %493 = vmatpush.msra.mxu0 %v470_v9 }
  0x91   : > { %906 = vmatpush.msra.mxu3 %v639_v46  ;;  %652 = vmatpush.msra.mxu1 %v639_v46 }
  0x92   : > { %895 = vmatpush.msra.mxu2 %v469_v10  ;;  %494 = vmatpush.msra.mxu0 %v469_v10  ;;  %v629_v10 = vld [vmem:[#allocation11] sm:$0xff] }
  0x93   : > { %907 = vmatpush.msra.mxu3 %v638_v48  ;;  %653 = vmatpush.msra.mxu1 %v638_v48 }
  0x94   : > { %896 = vmatpush.msra.mxu2 %v468_v11  ;;  %495 = vmatpush.msra.mxu0 %v468_v11 }
  0x95   : > { %908 = vmatpush.msra.mxu3 %v637_v49  ;;  %654 = vmatpush.msra.mxu1 %v637_v49 }
  0x96   : > { %897 = vmatpush.msra.mxu2 %v467_v12  ;;  %496 = vmatpush.msra.mxu0 %v467_v12 }
  0x97   : > { %909 = vmatpush.msra.mxu3 %v636_v50  ;;  %655 = vmatpush.msra.mxu1 %v636_v50  ;;  %v622_v50 = vld [vmem:[%s1557_s26 + $0x38] sm:$0xff] }
  0x98   : > { %898 = vmatpush.msra.mxu2 %v466_v13  ;;  %497 = vmatpush.msra.mxu0 %v466_v13 }
  0x99   : > { %910 = vmatpush.msra.mxu3 %v635_v51  ;;  %656 = vmatpush.msra.mxu1 %v635_v51 }
  0x9a   : > { %899 = vmatpush.msra.mxu2 %v465_v14  ;;  %498 = vmatpush.msra.mxu0 %v465_v14 }
  0x9b   : > { %911 = vmatpush.msra.mxu3 %v634_v54  ;;  %657 = vmatpush.msra.mxu1 %v634_v54  ;;  %v615_v54 = vld [vmem:[%s1557_s26 + $0x10] sm:$0xff] }
  0x9c   : > { %900 = vmatpush.msra.mxu2 %v464_v15  ;;  %499 = vmatpush.msra.mxu0 %v464_v15 }
  0x9d   : > { %503 = vmatmul.f32.vlgmr.msra.gmra.mxu2 %v463_v16  ;;  %500 = vmatmul.f32.vlgmr.msra.gmra.mxu0 %v462_v17 }
  0x9e   : > { %912 = vmatpush.msra.mxu3 %v633_v56  ;;  %658 = vmatpush.msra.mxu1 %v633_v56 }
  0xa0   : > { %913 = vmatpush.msra.mxu3 %v632_v59  ;;  %659 = vmatpush.msra.mxu1 %v632_v59 }
  0xa2   : > { %914 = vmatpush.msra.mxu3 %v631_v62  ;;  %660 = vmatpush.msra.mxu1 %v631_v62 }
  0xa4   : > { %915 = vmatpush.msra.mxu3 %v630_v3  ;;  %661 = vmatpush.msra.mxu1 %v630_v3 }
  0xa6   : > { %916 = vmatpush.msra.mxu3 %v629_v10  ;;  %662 = vmatpush.msra.mxu1 %v629_v10 }
 0x11a   : > { %v501_v19 = vpop.f32.mrf.mxu0 }
 0x11b   : > { %v502_v21 = vadd.f32 %v1005_v18, %v501_v19 }
 0x11d   : > { %v509_v22 = vmul.f32 %v507_v20, %v502_v21  ;;  %v517_v30 = vmul.f32 %v515_v26, %v502_v21  ;;  %v533_v37 = vmul.f32 %v531_v35, %v502_v21  ;;  %v525_v38 = vmul.f32 %v523_v36, %v502_v21 }
 0x11f   : > { %511 = vadd.xlane.f32.xlu2 %v509_v22 }
 0x120   : > { %v504_v23 = vpop.f32.mrf.mxu2 }
 0x121   : > { %v505_v27 = vadd.f32 %v1005_v18, %v504_v23 }
 0x123   : > { %v526_v28 = vmul.f32 %v524_v24, %v505_v27  ;;  %v510_v29 = vmul.f32 %v508_v25, %v505_v27  ;;  %v534_v33 = vmul.f32 %v532_v31, %v505_v27  ;;  %v518_v34 = vmul.f32 %v516_v32, %v505_v27  ;;  %v606_v31 = vld [vmem:[%s1557_s26 + $0x20] sm:$0xff]  ;;  %v610_v32 = vld [vmem:[%s1557_s26 + $0x28] sm:$0xff] }
 0x125   : > { %529 = vadd.xlane.f32.xlu1 %v526_v28  ;;  %513 = vadd.xlane.f32.xlu0 %v510_v29 }
 0x127   : > { %519 = vadd.xlane.f32.xlu2 %v517_v30 }
 0x12d   : > { %537 = vadd.xlane.f32.xlu1 %v534_v33  ;;  %521 = vadd.xlane.f32.xlu0 %v518_v34 }
 0x135   : > { %535 = vadd.xlane.f32.xlu1 %v533_v37  ;;  %527 = vadd.xlane.f32.xlu0 %v525_v38 }
 0x192   : > { %v512_v47 = vpop.xlane.xlu2 %511 }
 0x198   : > { %v530_v44 = vpop.xlane.xlu1 %529  ;;  %v514_v45 = vpop.xlane.xlu0 %513 }
 0x19a   : > { %v520_v57 = vpop.xlane.xlu2 %519 }
 0x19b   : > { %v539_v61 = vmax.f32 %v512_v47, %v520_v57 }
 0x1a0   : > { %v538_v52 = vpop.xlane.xlu1 %537  ;;  %v522_v53 = vpop.xlane.xlu0 %521 }
 0x1a1   : > { %v540_v55 = vmax.f32 %v514_v45, %v522_v53 }
 0x1a3   : > { %v542_v58 = vmax.f32 %v540_v55, %v530_v44 }
 0x1a5   : > { %v544_v60 = vmax.f32 %v542_v58, %v538_v52 }
 0x1a7   : > { %v546_v63 = vsub.f32 %v514_v45, %v544_v60  ;;  %v552_v0 = vsub.f32 %v522_v53, %v544_v60  ;;  %v558_v1 = vsub.f32 %v530_v44, %v544_v60  ;;  %v564_v4 = vsub.f32 %v538_v52, %v544_v60 }
 0x1a8   : > { %v528_v2 = vpop.xlane.xlu0 %527  ;;  %v536_v9 = vpop.xlane.xlu1 %535 }
 0x1a9   : > { %v549_v5 = vmul.f32 1.442695, %v546_v63  ;;  %v555_v6 = vmul.f32 1.442695, %v552_v0  ;;  %v541_v7 = vmax.f32 %v539_v61, %v528_v2  ;;  %v561_v8 = vmul.f32 1.442695, %v558_v1 }
 0x1aa   : > { %v567_v12 = vmul.f32 1.442695, %v564_v4  ;;  %v621_v4 = vld [vmem:[%s1557_s26 + $0x18] sm:$0xff] }
 0x1ab   : > { %1006 = vpow2.f32 %v549_v5  ;;  %v543_v11 = vmax.f32 %v541_v7, %v536_v9 }
 0x1ac   : > { %1008 = vpow2.f32 %v555_v6 }
 0x1ad   : > { %v545_v13 = vsub.f32 %v512_v47, %v543_v11  ;;  %v551_v14 = vsub.f32 %v520_v57, %v543_v11  ;;  %v557_v15 = vsub.f32 %v528_v2, %v543_v11  ;;  %1010 = vpow2.f32 %v561_v8 }
 0x1ae   : > { %v563_v16 = vsub.f32 %v536_v9, %v543_v11  ;;  %1012 = vpow2.f32 %v567_v12 }
 0x1af   : > { %v547_v17 = vmul.f32 1.442695, %v545_v13  ;;  %v553_v18 = vmul.f32 1.442695, %v551_v14  ;;  %v559_v19 = vmul.f32 1.442695, %v557_v15 }
 0x1b0   : > { %v565_v22 = vmul.f32 1.442695, %v563_v16  ;;  %v645_v15 = vld [vmem:[%s400_s17] sm:$0xff]  ;;  %v646_v16 = vld [vmem:[%s400_s17 + $0x8] sm:$0xff] }
 0x1b1   : > { %v1007_v20 = vpop.eup %1006  ;;  %1014 = vpow2.f32 %v547_v17 }
 0x1b2   : > { %v1009_v21 = vpop.eup %1008  ;;  %1016 = vpow2.f32 %v553_v18  ;;  %v608_v36 = vmul.f32 %v1007_v20, %v606_v31 }
 0x1b3   : > { %v570_v23 = vadd.f32 %v1009_v21, %v1007_v20  ;;  %v1011_v24 = vpop.eup %1010  ;;  %1018 = vpow2.f32 %v559_v19  ;;  %v612_v37 = vmul.f32 %v1009_v21, %v610_v32 }
 0x1b4   : > { %v1013_v26 = vpop.eup %1012  ;;  %1020 = vpow2.f32 %v565_v22  ;;  %v618_v48 = vmul.f32 %v1011_v24, %v616_v42 }
 0x1b5   : > { %v572_v25 = vadd.f32 %v1011_v24, %v570_v23  ;;  %v614_v44 = vadd.f32 %v612_v37, %v608_v36  ;;  %v624_v58 = vmul.f32 %v1013_v26, %v622_v50 }
 0x1b7   : > { %v1015_v27 = vpop.eup %1014  ;;  %v574_v28 = vadd.f32 %v1013_v26, %v572_v25  ;;  %v620_v53 = vadd.f32 %v618_v48, %v614_v44 }
 0x1b8   : > { %v1017_v29 = vpop.eup %1016  ;;  %v607_v45 = vmul.f32 %v1015_v27, %v605_v39 }
 0x1b9   : > { %v569_v30 = vadd.f32 %v1017_v29, %v1015_v27  ;;  %1022 = vrcp.f32 %v574_v28  ;;  %v1019_v33 = vpop.eup %1018  ;;  %v611_v46 = vmul.f32 %v1017_v29, %v609_v40  ;;  %v601_v49 = vand.u32 2147483648, %v574_v28 }
 0x1ba   : > { %v1021_v35 = vpop.eup %1020  ;;  %v599_v52 = vand.u32 2147483647, %v574_v28  ;;  %vm595_vm1 = vweird.f32 %v574_v28  ;;  %v617_v61 = vmul.f32 %v1019_v33, %v615_v54  ;;  %v626_v63 = vadd.f32 %v624_v58, %v620_v53 }
 0x1bb   : > { %v571_v34 = vadd.f32 %v1019_v33, %v569_v30  ;;  %v613_v56 = vadd.f32 %v611_v46, %v607_v45  ;;  %v602_v60 = vor.u32 1.1754944e-38, %v601_v49  ;;  %v623_v9 = vmul.f32 %v1021_v35, %v621_v4 }
 0x1bc   : > { %vm600_vm3 = vcmp.eq.f32.partialorder %v599_v52, 8.507059e+37 }
 0x1bd   : > { %v573_v38 = vadd.f32 %v1021_v35, %v571_v34  ;;  %v619_v3 = vadd.f32 %v617_v61, %v613_v56 }
 0x1bf   : > { %v1023_v41 = vpop.eup %1022  ;;  %1024 = vrcp.f32 %v573_v38  ;;  %v586_v2 = vand.u32 2147483648, %v573_v38  ;;  %v584_v7 = vand.u32 2147483647, %v573_v38  ;;  %vm580_vm5 = vweird.f32 %v573_v38 }
 0x1c0   : > { %v591_v43 = vmul.f32 %v1023_v41, %v574_v28  ;;  %vm596_vm0 = vweird.f32 %v1023_v41  ;;  %v625_v12 = vadd.f32 %v623_v9, %v619_v3 }
 0x1c1   : > { %vm597_vm2 = vmor %vm595_vm1, %vm596_vm0  ;;  %v587_v10 = vor.u32 1.1754944e-38, %v586_v2  ;;  %vm585_vm7 = vcmp.eq.f32.partialorder %v584_v7, 8.507059e+37 }
 0x1c2   : > { %v592_v47 = vsub.f32 1.0, %v591_v43 }
 0x1c4   : > { %v593_v51 = vmul.f32 %v1023_v41, %v592_v47 }
 0x1c5   : > { %v1025_v55 = vpop.eup %1024 }
 0x1c6   : > { %v594_v57 = vadd.f32 %v1023_v41, %v593_v51  ;;  %v576_v59 = vmul.f32 %v1025_v55, %v573_v38  ;;  %vm581_vm4 = vweird.f32 %v1025_v55 }
 0x1c7   : > { %vm582_vm6 = vmor %vm580_vm5, %vm581_vm4 }
 0x1c8   : > { %v598_v62 = vsel %vm597_vm2, %v1023_v41, %v594_v57  ;;  %v577_v0 = vsub.f32 1.0, %v576_v59 }
 0x1c9   : > { %v603_v1 = vsel %vm600_vm3, %v602_v60, %v598_v62 }
 0x1ca   : > { %v628_v5 = vmul.f32 %v626_v63, %v603_v1  ;;  %v578_v6 = vmul.f32 %v1025_v55, %v577_v0 }
 0x1cc   : > { %666 = vmatmul.f32.vlgmr.msra.gmra.mxu3 %v628_v5  ;;  %v579_v8 = vadd.f32 %v1025_v55, %v578_v6 }
 0x1ce   : > { %v583_v11 = vsel %vm582_vm6, %v1025_v55, %v579_v8 }
 0x1cf   : > { %v588_v13 = vsel %vm585_vm7, %v587_v10, %v583_v11 }
 0x1d0   : > { %v627_v14 = vmul.f32 %v625_v12, %v588_v13 }
 0x1d2   : > { %663 = vmatmul.f32.vlgmr.msra.gmra.mxu1 %v627_v14 }
 0x24f   : > { %v664_v17 = vpop.f32.mrf.mxu1  ;;  %v667_v18 = vpop.f32.mrf.mxu3 }
 0x250   : > { %v665_v19 = vadd.f32 %v664_v17, %v645_v15  ;;  %v668_v20 = vadd.f32 %v667_v18, %v646_v16 }
 0x252   : > { %670 = vst [vmem:[%s456_s15] sm:$0xff] %v665_v19 }
 0x253   : > { %671 = vst [vmem:[%s456_s15 + $0x8] sm:$0xff] %v668_v20 }
 0x254   : > { %1233 = shalt.err (!%p1230_p2)
}
 0x255   : > { %s1296_s4 = smov 128   ;;  %s1297_s11 = smov 8  }
 0x256   : > { %933 = dma.vmem_to_hbm [thread:$0]  (%p1414_p7), %s686_s6, 256, %s688_s29, %s673_s28, %s1296_s4, %s1296_s4, %s1297_s11  }
 0x257 PF: > { %s1686_s24 = sld [smem:[#allocation20_spill]]  ;;  %p1688_p13 = scmp.ge.s32.totalorder %s1288_s27, 2 }
 0x259   : > { %p956_p8 = pnand %p1688_p13, %p1373_p6 }
 0x25b   : > { %p957_p9 = pneg %p956_p8 }
 0x25d   : > { %s702_s10 = sand.u32 1, %s1686_s24  }
 0x25e   : > { %s703_s17 = scalar_lea.sflag [#allocation4], %s702_s10 }
 0x25f   : > { %1271 = dma.done.wait (%p957_p9), %s703_s17, 256  }
 0x260   : > { %1273 = vsyncadd (%p957_p9), %s703_s17, 4294967040  ;;  %s1689_s27 = sld [smem:[#allocation23_spill]]  ;;  %s1692_s24 = smov %s1280_s25 }
 0x261   : > { %s1690_s30 = sld [smem:[#allocation21_spill]] }
 0x262   : > { %s1691_s26 = sld [smem:[#allocation24_spill]] }
 0x266   : > { %p27_p12 = scmp.ge.s32.totalorder %s1689_s27, 4  }
 0x267   : > { %s1693_s25 = smov %s1690_s30 }
 0x268   :  { %29 = sbr.rel (!%p27_p12) target bundleno = 14 (0xe), region = 138 }
 0x26d   :  { %709 = vsyncpa [#allocation3], 1 }
 0x26e   :  { %711 = vsyncpa [#allocation3 + $0x1], 1 }
 0x26f   :  { %712 = vsyncpa [#allocation6], 1 }
 0x270   :  { %714 = vsyncpa [#allocation6 + $0x1], 1 }
 0x271   :  { %715 = vsyncpa [#allocation9], 1 }
 0x272   :  { %717 = vsyncpa [#allocation9 + $0x1], 1 }
 0x273   :  { %718 = vsyncpa [#allocation12], 1 }
 0x274   :  { %719 = vsyncpa [#allocation4], 1 }
 0x275   :  { %721 = vsyncpa [#allocation4 + $0x1], 1 }

</bundles_post_ra>
